<compile_context>
chip_gen: v5e
topology: v5e:2x2
jax: 0.10.0
libtpu: 0.0.40
codegen_flags: <defaults>
</compile_context>

<pallas_src>
import functools
import math

import jax
import jax.numpy as jnp
from jax.experimental import pallas as pl
from jax.experimental.pallas import tpu as pltpu

# ---- small synthetic BERT config ----
VOCAB, MAX_POS, TYPE_VOCAB = 100, 16, 2
HIDDEN, N_HEADS, N_LAYERS, INTER = 32, 2, 2, 64
HEAD_DIM = HIDDEN // N_HEADS
SEQ, BATCH = 8, 2
LN_EPS, BN_EPS = 1e-12, 1e-5
NUM_CLASSES = 3


# ---------------- in-kernel helpers (operate on values, all f32) ----------------
def _ln(h, g, b):
    mu = jnp.mean(h, axis=-1, keepdims=True)
    var = jnp.mean((h - mu) * (h - mu), axis=-1, keepdims=True)
    return (h - mu) * jax.lax.rsqrt(var + LN_EPS) * g + b


def _gelu(y):  # tanh-approx GELU (BERT intermediate activation)
    return 0.5 * y * (1.0 + jnp.tanh(0.7978845608028654 * (y + 0.044715 * y * y * y)))


# ---------------- the fused kernel ----------------
def _bert_cls_kernel(
        # fixed inputs
        emb_ref, emb_g_ref, emb_b_ref, mask_ref,
        # per-layer stacked weights (leading layer axis, selected via index_map)
        wqkv_ref, bqkv_ref, wo_ref, bo_ref, ln1g_ref, ln1b_ref,
        wi_ref, bi_ref, wo2_ref, bo2_ref, ln2g_ref, ln2b_ref,
        # pooler + classifier head
        pool_w_ref, pool_b_ref,
        w1_ref, b1_ref, bn1s_ref, bn1t_ref,
        w2_ref, b2_ref, bn2s_ref, bn2t_ref,
        w3_ref, b3_ref,
        # output + scratch
        logits_ref, x_ref,
        *, batch, seq):
    layer = pl.program_id(0)
    bs = batch * seq

    # ----- grid step 0: embedding LayerNorm into the persistent activation -----
    @pl.when(layer == 0)
    def _():
        x_ref[...] = _ln(emb_ref[...], emb_g_ref[...], emb_b_ref[...])

    x = x_ref[...]                       # (B*S, H), resident in VMEM across layers
    mask2d = mask_ref[...]               # (B*S, B*S) block-diagonal + padding mask

    # ----- self-attention: fused QKV matmul, heads as static lane slices -----
    qkv = jnp.dot(x, wqkv_ref[0], preferred_element_type=jnp.float32) + bqkv_ref[0]
    wo = wo_ref[0]
    scale = 1.0 / math.sqrt(HEAD_DIM)
    head_outs = []
    for h in range(N_HEADS):             # static unroll (N_HEADS = 2)
        lo = h * HEAD_DIM
        qh = qkv[:, lo:lo + HEAD_DIM] * scale           # fold scale into Q
        kh = qkv[:, HIDDEN + lo:HIDDEN + lo + HEAD_DIM]
        vh = qkv[:, 2 * HIDDEN + lo:2 * HIDDEN + lo + HEAD_DIM]
        s = jax.lax.dot_general(qh, kh, (((1,), (1,)), ((), ())),
                                preferred_element_type=jnp.float32)
        s = s + mask2d                   # mask keeps batches block-diagonal
        s = s - jnp.max(s, axis=-1, keepdims=True)
        p = jnp.exp(s)
        p = p * pl.reciprocal(jnp.sum(p, axis=-1, keepdims=True), approx=True)
        ctx = jnp.dot(p, vh, preferred_element_type=jnp.float32)         # (B*S, HD)
        # fold head-merge into the output projection: ctx_h @ Wo[h*HD:(h+1)*HD, :]
        head_outs.append(jnp.dot(ctx, wo[lo:lo + HEAD_DIM, :],
                                 preferred_element_type=jnp.float32))
    attn = functools.reduce(lambda a, b: a + b, head_outs) + bo_ref[0]
    x = _ln(attn + x, ln1g_ref[0], ln1b_ref[0])

    # ----- feed-forward -----
    inter = _gelu(jnp.dot(x, wi_ref[0], preferred_element_type=jnp.float32)
                  + bi_ref[0])
    ffn = jnp.dot(inter, wo2_ref[0], preferred_element_type=jnp.float32) + bo2_ref[0]
    x = _ln(ffn + x, ln2g_ref[0], ln2b_ref[0])
    x_ref[...] = x

    # ----- last grid step: pooler + classifier head, all in vregs/VMEM -----
    @pl.when(layer == pl.num_programs(0) - 1)
    def _():
        # pick the [CLS] row of every sequence with a tiny selection matmul
        # (stays on the MXU; avoids sublane gathers)
        col = jax.lax.broadcasted_iota(jnp.int32, (batch, bs), 1)
        row = jax.lax.broadcasted_iota(jnp.int32, (batch, bs), 0)
        sel = (col == row * seq).astype(jnp.float32)
        cls = jnp.dot(sel, x, preferred_element_type=jnp.float32)        # (B, H)
        pooled = jnp.tanh(jnp.dot(cls, pool_w_ref[...],
                                  preferred_element_type=jnp.float32) + pool_b_ref[...])
        h1 = jnp.dot(pooled, w1_ref[...],
                     preferred_element_type=jnp.float32) + b1_ref[...]
        h1 = jnp.maximum(h1 * bn1s_ref[...] + bn1t_ref[...], 0.0)        # BN(eval)+ReLU
        h2 = jnp.dot(h1, w2_ref[...],
                     preferred_element_type=jnp.float32) + b2_ref[...]
        h2 = jnp.maximum(h2 * bn2s_ref[...] + bn2t_ref[...], 0.0)
        logits_ref[...] = jnp.dot(h2, w3_ref[...],
                                  preferred_element_type=jnp.float32) + b3_ref[...]


# ---------------- parameter init (deterministic, synthetic) ----------------
def init_params(key):
    keys = iter(jax.random.split(key, 64))

    def nrm(shape, std=0.02):
        return std * jax.random.normal(next(keys), shape, jnp.float32)

    def xavier(shape):  # matches nn.init.xavier_normal_ std
        fan_in, fan_out = shape
        std = math.sqrt(2.0 / (fan_in + fan_out))
        return std * jax.random.normal(next(keys), shape, jnp.float32)

    p = {
        "word_emb": nrm((VOCAB, HIDDEN)),
        "pos_emb": nrm((MAX_POS, HIDDEN)),
        "type_emb": nrm((TYPE_VOCAB, HIDDEN)),
        "emb_ln_g": jnp.ones((HIDDEN,), jnp.float32),
        "emb_ln_b": jnp.zeros((HIDDEN,), jnp.float32),
        "pool_w": nrm((HIDDEN, HIDDEN)),
        "pool_b": jnp.zeros((HIDDEN,), jnp.float32),
        # classifier: xavier_normal_ weights, zero biases (as in _init_weights)
        "cls_w1": xavier((HIDDEN, HIDDEN)),
        "cls_b1": jnp.zeros((HIDDEN,), jnp.float32),
        "bn1_g": jnp.ones((HIDDEN,), jnp.float32),
        "bn1_b": jnp.zeros((HIDDEN,), jnp.float32),
        "bn1_m": jnp.zeros((HIDDEN,), jnp.float32),
        "bn1_v": jnp.ones((HIDDEN,), jnp.float32),
        "cls_w2": xavier((HIDDEN, HIDDEN // 2)),
        "cls_b2": jnp.zeros((HIDDEN // 2,), jnp.float32),
        "bn2_g": jnp.ones((HIDDEN // 2,), jnp.float32),
        "bn2_b": jnp.zeros((HIDDEN // 2,), jnp.float32),
        "bn2_m": jnp.zeros((HIDDEN // 2,), jnp.float32),
        "bn2_v": jnp.ones((HIDDEN // 2,), jnp.float32),
        "cls_w3": xavier((HIDDEN // 2, NUM_CLASSES)),
        "cls_b3": jnp.zeros((NUM_CLASSES,), jnp.float32),
    }

    # per-layer weights, stacked along a leading layer axis; QKV fused on lanes
    wqkv, bqkv, wo, bo, ln1g, ln1b = [], [], [], [], [], []
    wi, bi, wo2, bo2, ln2g, ln2b = [], [], [], [], [], []
    for _ in range(N_LAYERS):
        wq, wk, wv = nrm((HIDDEN, HIDDEN)), nrm((HIDDEN, HIDDEN)), nrm((HIDDEN, HIDDEN))
        wqkv.append(jnp.concatenate([wq, wk, wv], axis=1))
        bqkv.append(jnp.zeros((1, 3 * HIDDEN), jnp.float32))
        wo.append(nrm((HIDDEN, HIDDEN)))
        bo.append(jnp.zeros((1, HIDDEN), jnp.float32))
        ln1g.append(jnp.ones((1, HIDDEN), jnp.float32))
        ln1b.append(jnp.zeros((1, HIDDEN), jnp.float32))
        wi.append(nrm((HIDDEN, INTER)))
        bi.append(jnp.zeros((1, INTER), jnp.float32))
        wo2.append(nrm((INTER, HIDDEN)))
        bo2.append(jnp.zeros((1, HIDDEN), jnp.float32))
        ln2g.append(jnp.ones((1, HIDDEN), jnp.float32))
        ln2b.append(jnp.zeros((1, HIDDEN), jnp.float32))
    for name, lst in [("wqkv", wqkv), ("bqkv", bqkv), ("wo", wo), ("bo", bo),
                      ("ln1_g", ln1g), ("ln1_b", ln1b), ("wi", wi), ("bi", bi),
                      ("wo2", wo2), ("bo2", bo2), ("ln2_g", ln2g), ("ln2_b", ln2b)]:
        p[name] = jnp.stack(lst)
    return p


# ---------------- forward pass (one pallas_call) ----------------
def forward(params, input_ids, attention_mask):
    B, S = input_ids.shape
    H, H2 = HIDDEN, HIDDEN // 2
    BS = B * S

    # ---- glue (plain JAX): embedding gather/sum, mask build, BN folding ----
    emb = (jnp.take(params["word_emb"], input_ids, axis=0)
           + params["pos_emb"][:S][None, :, :]
           + params["type_emb"][0][None, None, :]).reshape(BS, H).astype(jnp.float32)

    key_mask = attention_mask.reshape(BS).astype(jnp.float32)
    batch_ids = jnp.repeat(jnp.arange(B), S)
    same = batch_ids[:, None] == batch_ids[None, :]
    # block-diagonal over batch + BERT-style additive padding mask, shape (BS, BS)
    mask2d = jnp.where(same, (1.0 - key_mask)[None, :] * -10000.0,
                       -1e9).astype(jnp.float32)

    # fold eval-mode BatchNorm1d into scale/shift
    bn1_s = params["bn1_g"] * jax.lax.rsqrt(params["bn1_v"] + BN_EPS)
    bn1_t = params["bn1_b"] - params["bn1_m"] * bn1_s
    bn2_s = params["bn2_g"] * jax.lax.rsqrt(params["bn2_v"] + BN_EPS)
    bn2_t = params["bn2_b"] - params["bn2_m"] * bn2_s

    row = lambda t: t.reshape(1, -1)

    def full(shape):
        n = len(shape)
        return pl.BlockSpec(shape, lambda l, n=n: (0,) * n)

    def per_layer(shape):  # shape excludes the leading layer axis
        n = len(shape)
        return pl.BlockSpec((1,) + shape, lambda l, n=n: (l,) + (0,) * n)

    in_specs = [
        full((BS, H)), full((1, H)), full((1, H)), full((BS, BS)),
        per_layer((H, 3 * H)), per_layer((1, 3 * H)),
        per_layer((H, H)), per_layer((1, H)),
        per_layer((1, H)), per_layer((1, H)),
        per_layer((H, INTER)), per_layer((1, INTER)),
        per_layer((INTER, H)), per_layer((1, H)),
        per_layer((1, H)), per_layer((1, H)),
        full((H, H)), full((1, H)),
        full((H, H)), full((1, H)), full((1, H)), full((1, H)),
        full((H, H2)), full((1, H2)), full((1, H2)), full((1, H2)),
        full((H2, NUM_CLASSES)), full((1, NUM_CLASSES)),
    ]

    grid_spec = pltpu.PrefetchScalarGridSpec(
        num_scalar_prefetch=0,
        grid=(N_LAYERS,),
        in_specs=in_specs,
        out_specs=pl.BlockSpec((B, NUM_CLASSES), lambda l: (0, 0)),
        scratch_shapes=[pltpu.VMEM((BS, H), jnp.float32)],
    )

    return pl.pallas_call(
        functools.partial(_bert_cls_kernel, batch=B, seq=S),
        out_shape=jax.ShapeDtypeStruct((B, NUM_CLASSES), jnp.float32),
        grid_spec=grid_spec,
        compiler_params=pltpu.CompilerParams(
            dimension_semantics=("arbitrary",)),   # layers are strictly sequential
    )(
        emb, row(params["emb_ln_g"]), row(params["emb_ln_b"]), mask2d,
        params["wqkv"], params["bqkv"], params["wo"], params["bo"],
        params["ln1_g"], params["ln1_b"],
        params["wi"], params["bi"], params["wo2"], params["bo2"],
        params["ln2_g"], params["ln2_b"],
        params["pool_w"], row(params["pool_b"]),
        params["cls_w1"], row(params["cls_b1"]), row(bn1_s), row(bn1_t),
        params["cls_w2"], row(params["cls_b2"]), row(bn2_s), row(bn2_t),
        params["cls_w3"], row(params["cls_b3"]),
    )


if __name__ == "__main__":
    key = jax.random.PRNGKey(0)
    pkey, ikey = jax.random.split(key)
    params = init_params(pkey)

    input_ids = jax.random.randint(ikey, (BATCH, SEQ), 0, VOCAB, dtype=jnp.int32)
    attention_mask = jnp.ones((BATCH, SEQ), jnp.int32).at[1, SEQ - 2:].set(0)

    logits = jax.jit(forward)(params, input_ids, attention_mask)
    jax.block_until_ready(logits)
    assert logits.shape == (BATCH, NUM_CLASSES) and logits.dtype == jnp.float32
    assert bool(jnp.all(jnp.isfinite(logits)))
    print("KERNEL_OK")
</pallas_src>

<mosaic_0001>
module attributes {stable_mosaic.version = 11 : i64} {
  func.func @_bert_cls_kernel(%arg0: i32, %arg1: memref<16x32xf32, #tpu.memory_space<vmem>>, %arg2: memref<1x32xf32, #tpu.memory_space<vmem>>, %arg3: memref<1x32xf32, #tpu.memory_space<vmem>>, %arg4: memref<16x16xf32, #tpu.memory_space<vmem>>, %arg5: memref<1x32x96xf32, #tpu.memory_space<vmem>>, %arg6: memref<1x1x96xf32, #tpu.memory_space<vmem>>, %arg7: memref<1x32x32xf32, #tpu.memory_space<vmem>>, %arg8: memref<1x1x32xf32, #tpu.memory_space<vmem>>, %arg9: memref<1x1x32xf32, #tpu.memory_space<vmem>>, %arg10: memref<1x1x32xf32, #tpu.memory_space<vmem>>, %arg11: memref<1x32x64xf32, #tpu.memory_space<vmem>>, %arg12: memref<1x1x64xf32, #tpu.memory_space<vmem>>, %arg13: memref<1x64x32xf32, #tpu.memory_space<vmem>>, %arg14: memref<1x1x32xf32, #tpu.memory_space<vmem>>, %arg15: memref<1x1x32xf32, #tpu.memory_space<vmem>>, %arg16: memref<1x1x32xf32, #tpu.memory_space<vmem>>, %arg17: memref<32x32xf32, #tpu.memory_space<vmem>>, %arg18: memref<1x32xf32, #tpu.memory_space<vmem>>, %arg19: memref<32x32xf32, #tpu.memory_space<vmem>>, %arg20: memref<1x32xf32, #tpu.memory_space<vmem>>, %arg21: memref<1x32xf32, #tpu.memory_space<vmem>>, %arg22: memref<1x32xf32, #tpu.memory_space<vmem>>, %arg23: memref<32x16xf32, #tpu.memory_space<vmem>>, %arg24: memref<1x16xf32, #tpu.memory_space<vmem>>, %arg25: memref<1x16xf32, #tpu.memory_space<vmem>>, %arg26: memref<1x16xf32, #tpu.memory_space<vmem>>, %arg27: memref<16x3xf32, #tpu.memory_space<vmem>>, %arg28: memref<1x3xf32, #tpu.memory_space<vmem>>, %arg29: memref<2x3xf32, #tpu.memory_space<vmem>>, %arg30: memref<16x32xf32, #tpu.memory_space<vmem>>) attributes {dimension_semantics = [#tpu.dimension_semantics<arbitrary>], iteration_bounds = array<i64: 2>, scalar_prefetch = 0 : i64, scratch_operands = 1 : i64, tpu.core_type = #tpu.core_type<tc>, window_params = [{pipeline_mode = #tpu.pipeline_mode<synchronous>, transform_indices = @transform_0, window_bounds = array<i64: 16, 32>}, {pipeline_mode = #tpu.pipeline_mode<synchronous>, transform_indices = @transform_1, window_bounds = array<i64: 1, 32>}, {pipeline_mode = #tpu.pipeline_mode<synchronous>, transform_indices = @transform_2, window_bounds = array<i64: 1, 32>}, {pipeline_mode = #tpu.pipeline_mode<synchronous>, transform_indices = @transform_3, window_bounds = array<i64: 16, 16>}, {transform_indices = @transform_4, window_bounds = array<i64: 1, 32, 96>}, {transform_indices = @transform_5, window_bounds = array<i64: 1, 1, 96>}, {transform_indices = @transform_6, window_bounds = array<i64: 1, 32, 32>}, {transform_indices = @transform_7, window_bounds = array<i64: 1, 1, 32>}, {transform_indices = @transform_8, window_bounds = array<i64: 1, 1, 32>}, {transform_indices = @transform_9, window_bounds = array<i64: 1, 1, 32>}, {transform_indices = @transform_10, window_bounds = array<i64: 1, 32, 64>}, {transform_indices = @transform_11, window_bounds = array<i64: 1, 1, 64>}, {transform_indices = @transform_12, window_bounds = array<i64: 1, 64, 32>}, {transform_indices = @transform_13, window_bounds = array<i64: 1, 1, 32>}, {transform_indices = @transform_14, window_bounds = array<i64: 1, 1, 32>}, {transform_indices = @transform_15, window_bounds = array<i64: 1, 1, 32>}, {pipeline_mode = #tpu.pipeline_mode<synchronous>, transform_indices = @transform_16, window_bounds = array<i64: 32, 32>}, {pipeline_mode = #tpu.pipeline_mode<synchronous>, transform_indices = @transform_17, window_bounds = array<i64: 1, 32>}, {pipeline_mode = #tpu.pipeline_mode<synchronous>, transform_indices = @transform_18, window_bounds = array<i64: 32, 32>}, {pipeline_mode = #tpu.pipeline_mode<synchronous>, transform_indices = @transform_19, window_bounds = array<i64: 1, 32>}, {pipeline_mode = #tpu.pipeline_mode<synchronous>, transform_indices = @transform_20, window_bounds = array<i64: 1, 32>}, {pipeline_mode = #tpu.pipeline_mode<synchronous>, transform_indices = @transform_21, window_bounds = array<i64: 1, 32>}, {pipeline_mode = #tpu.pipeline_mode<synchronous>, transform_indices = @transform_22, window_bounds = array<i64: 32, 16>}, {pipeline_mode = #tpu.pipeline_mode<synchronous>, transform_indices = @transform_23, window_bounds = array<i64: 1, 16>}, {pipeline_mode = #tpu.pipeline_mode<synchronous>, transform_indices = @transform_24, window_bounds = array<i64: 1, 16>}, {pipeline_mode = #tpu.pipeline_mode<synchronous>, transform_indices = @transform_25, window_bounds = array<i64: 1, 16>}, {pipeline_mode = #tpu.pipeline_mode<synchronous>, transform_indices = @transform_26, window_bounds = array<i64: 16, 3>}, {pipeline_mode = #tpu.pipeline_mode<synchronous>, transform_indices = @transform_27, window_bounds = array<i64: 1, 3>}, {pipeline_mode = #tpu.pipeline_mode<synchronous>, transform_indices = @transform_28, window_bounds = array<i64: 2, 3>}]} {
    %c0_i32 = arith.constant 0 : i32
    %0 = arith.cmpi eq, %arg0, %c0_i32 : i32
    %1 = arith.extui %0 : i1 to i32
    %c0_i32_0 = arith.constant 0 : i32
    %2 = arith.cmpi ne, %1, %c0_i32_0 : i32
    scf.if %2 {
      %c0_71 = arith.constant 0 : index
      %c0_72 = arith.constant 0 : index
      %148 = vector.load %arg1[%c0_71, %c0_72] : memref<16x32xf32, #tpu.memory_space<vmem>>, vector<16x32xf32>
      %c0_73 = arith.constant 0 : index
      %c0_74 = arith.constant 0 : index
      %149 = vector.load %arg2[%c0_73, %c0_74] : memref<1x32xf32, #tpu.memory_space<vmem>>, vector<1x32xf32>
      %c0_75 = arith.constant 0 : index
      %c0_76 = arith.constant 0 : index
      %150 = vector.load %arg3[%c0_75, %c0_76] : memref<1x32xf32, #tpu.memory_space<vmem>>, vector<1x32xf32>
      %cst_77 = arith.constant dense<0.000000e+00> : vector<16xf32>
      %151 = vector.multi_reduction <add>, %148, %cst_77 [1] : vector<16x32xf32> to vector<16xf32>
      %152 = vector.shape_cast %151 : vector<16xf32> to vector<16x1xf32>
      %cst_78 = arith.constant 3.200000e+01 : f32
      %153 = vector.broadcast %cst_78 : f32 to vector<16x1xf32>
      %154 = arith.divf %152, %153 : vector<16x1xf32>
      %155 = vector.broadcast %154 : vector<16x1xf32> to vector<16x32xf32>
      %156 = arith.subf %148, %155 : vector<16x32xf32>
      %157 = vector.broadcast %154 : vector<16x1xf32> to vector<16x32xf32>
      %158 = arith.subf %148, %157 : vector<16x32xf32>
      %159 = arith.mulf %156, %158 : vector<16x32xf32>
      %cst_79 = arith.constant dense<0.000000e+00> : vector<16xf32>
      %160 = vector.multi_reduction <add>, %159, %cst_79 [1] : vector<16x32xf32> to vector<16xf32>
      %161 = vector.shape_cast %160 : vector<16xf32> to vector<16x1xf32>
      %cst_80 = arith.constant 3.200000e+01 : f32
      %162 = vector.broadcast %cst_80 : f32 to vector<16x1xf32>
      %163 = arith.divf %161, %162 : vector<16x1xf32>
      %164 = vector.broadcast %154 : vector<16x1xf32> to vector<16x32xf32>
      %165 = arith.subf %148, %164 : vector<16x32xf32>
      %cst_81 = arith.constant 9.99999996E-13 : f32
      %166 = vector.broadcast %cst_81 : f32 to vector<16x1xf32>
      %167 = arith.addf %163, %166 : vector<16x1xf32>
      %168 = math.rsqrt %167 : vector<16x1xf32>
      %169 = vector.broadcast %168 : vector<16x1xf32> to vector<16x32xf32>
      %170 = arith.mulf %165, %169 : vector<16x32xf32>
      %171 = vector.broadcast %149 : vector<1x32xf32> to vector<16x32xf32>
      %172 = arith.mulf %170, %171 : vector<16x32xf32>
      %173 = vector.broadcast %150 : vector<1x32xf32> to vector<16x32xf32>
      %174 = arith.addf %172, %173 : vector<16x32xf32>
      %c0_82 = arith.constant 0 : index
      %c0_83 = arith.constant 0 : index
      %175 = vector.load %arg30[%c0_82, %c0_83] : memref<16x32xf32, #tpu.memory_space<vmem>>, vector<16x32xf32>
      tpu.vector_store %arg30[%c0_82, %c0_83], %174 {strides = array<i32>} : memref<16x32xf32, #tpu.memory_space<vmem>>, vector<16x32xf32>,
    } else {
    }
    %c0 = arith.constant 0 : index
    %c0_1 = arith.constant 0 : index
    %3 = vector.load %arg30[%c0, %c0_1] : memref<16x32xf32, #tpu.memory_space<vmem>>, vector<16x32xf32>
    %c0_2 = arith.constant 0 : index
    %c0_3 = arith.constant 0 : index
    %4 = vector.load %arg4[%c0_2, %c0_3] : memref<16x16xf32, #tpu.memory_space<vmem>>, vector<16x16xf32>
    %c0_4 = arith.constant 0 : index
    %c0_5 = arith.constant 0 : index
    %c0_6 = arith.constant 0 : index
    %5 = vector.load %arg5[%c0_4, %c0_5, %c0_6] : memref<1x32x96xf32, #tpu.memory_space<vmem>>, vector<1x32x96xf32>
    %6 = vector.shape_cast %5 : vector<1x32x96xf32> to vector<32x96xf32>
    %cst = arith.constant dense<0.000000e+00> : vector<16x96xf32>
    %7 = tpu.matmul %3, %6, %cst {dimension_numbers = #tpu.dot_dimension_numbers<[1], [0], [0], [1], [0, 0, 1, 1], [], []>} : vector<16x32xf32>, vector<32x96xf32>, vector<16x96xf32> -> vector<16x96xf32>
    %c0_7 = arith.constant 0 : index
    %c0_8 = arith.constant 0 : index
    %c0_9 = arith.constant 0 : index
    %8 = vector.load %arg6[%c0_7, %c0_8, %c0_9] : memref<1x1x96xf32, #tpu.memory_space<vmem>>, vector<1x1x96xf32>
    %9 = vector.shape_cast %8 : vector<1x1x96xf32> to vector<1x96xf32>
    %10 = vector.broadcast %9 : vector<1x96xf32> to vector<16x96xf32>
    %11 = arith.addf %7, %10 : vector<16x96xf32>
    %c0_10 = arith.constant 0 : index
    %c0_11 = arith.constant 0 : index
    %c0_12 = arith.constant 0 : index
    %12 = vector.load %arg7[%c0_10, %c0_11, %c0_12] : memref<1x32x32xf32, #tpu.memory_space<vmem>>, vector<1x32x32xf32>
    %13 = vector.shape_cast %12 : vector<1x32x32xf32> to vector<32x32xf32>
    %14 = vector.extract_strided_slice %11 {offsets = [0, 0], sizes = [16, 16], strides = [1, 1]} : vector<16x96xf32> to vector<16x16xf32>
    %cst_13 = arith.constant 2.500000e-01 : f32
    %15 = vector.broadcast %cst_13 : f32 to vector<16x16xf32>
    %16 = arith.mulf %14, %15 : vector<16x16xf32>
    %17 = vector.extract_strided_slice %11 {offsets = [0, 32], sizes = [16, 16], strides = [1, 1]} : vector<16x96xf32> to vector<16x16xf32>
    %18 = vector.extract_strided_slice %11 {offsets = [0, 64], sizes = [16, 16], strides = [1, 1]} : vector<16x96xf32> to vector<16x16xf32>
    %cst_14 = arith.constant dense<0.000000e+00> : vector<16x16xf32>
    %19 = tpu.matmul %16, %17, %cst_14 {dimension_numbers = #tpu.dot_dimension_numbers<[1], [1], [0], [0], [0, 0, 1, 0], [], []>} : vector<16x16xf32>, vector<16x16xf32>, vector<16x16xf32> -> vector<16x16xf32>
    %20 = arith.addf %19, %4 : vector<16x16xf32>
    %cst_15 = arith.constant dense<0xFF800000> : vector<16xf32>
    %21 = vector.multi_reduction <maximumf>, %20, %cst_15 [1] : vector<16x16xf32> to vector<16xf32>
    %22 = vector.shape_cast %21 : vector<16xf32> to vector<16x1xf32>
    %23 = vector.broadcast %22 : vector<16x1xf32> to vector<16x16xf32>
    %24 = arith.subf %20, %23 : vector<16x16xf32>
    %25 = math.exp %24 : vector<16x16xf32>
    %cst_16 = arith.constant dense<0.000000e+00> : vector<16xf32>
    %26 = vector.multi_reduction <add>, %25, %cst_16 [1] : vector<16x16xf32> to vector<16xf32>
    %27 = vector.shape_cast %26 : vector<16xf32> to vector<16x1xf32>
    %28 = tpu.reciprocal %27 {approx = true} : vector<16x1xf32> -> vector<16x1xf32>
    %29 = vector.broadcast %28 : vector<16x1xf32> to vector<16x16xf32>
    %30 = arith.mulf %25, %29 : vector<16x16xf32>
    %cst_17 = arith.constant dense<0.000000e+00> : vector<16x16xf32>
    %31 = tpu.matmul %30, %18, %cst_17 {dimension_numbers = #tpu.dot_dimension_numbers<[1], [0], [0], [1], [0, 0, 1, 1], [], []>} : vector<16x16xf32>, vector<16x16xf32>, vector<16x16xf32> -> vector<16x16xf32>
    %32 = vector.extract_strided_slice %13 {offsets = [0, 0], sizes = [16, 32], strides = [1, 1]} : vector<32x32xf32> to vector<16x32xf32>
    %cst_18 = arith.constant dense<0.000000e+00> : vector<16x32xf32>
    %33 = tpu.matmul %31, %32, %cst_18 {dimension_numbers = #tpu.dot_dimension_numbers<[1], [0], [0], [1], [0, 0, 1, 1], [], []>} : vector<16x16xf32>, vector<16x32xf32>, vector<16x32xf32> -> vector<16x32xf32>
    %34 = vector.extract_strided_slice %11 {offsets = [0, 16], sizes = [16, 16], strides = [1, 1]} : vector<16x96xf32> to vector<16x16xf32>
    %cst_19 = arith.constant 2.500000e-01 : f32
    %35 = vector.broadcast %cst_19 : f32 to vector<16x16xf32>
    %36 = arith.mulf %34, %35 : vector<16x16xf32>
    %37 = vector.extract_strided_slice %11 {offsets = [0, 48], sizes = [16, 16], strides = [1, 1]} : vector<16x96xf32> to vector<16x16xf32>
    %38 = vector.extract_strided_slice %11 {offsets = [0, 80], sizes = [16, 16], strides = [1, 1]} : vector<16x96xf32> to vector<16x16xf32>
    %cst_20 = arith.constant dense<0.000000e+00> : vector<16x16xf32>
    %39 = tpu.matmul %36, %37, %cst_20 {dimension_numbers = #tpu.dot_dimension_numbers<[1], [1], [0], [0], [0, 0, 1, 0], [], []>} : vector<16x16xf32>, vector<16x16xf32>, vector<16x16xf32> -> vector<16x16xf32>
    %40 = arith.addf %39, %4 : vector<16x16xf32>
    %cst_21 = arith.constant dense<0xFF800000> : vector<16xf32>
    %41 = vector.multi_reduction <maximumf>, %40, %cst_21 [1] : vector<16x16xf32> to vector<16xf32>
    %42 = vector.shape_cast %41 : vector<16xf32> to vector<16x1xf32>
    %43 = vector.broadcast %42 : vector<16x1xf32> to vector<16x16xf32>
    %44 = arith.subf %40, %43 : vector<16x16xf32>
    %45 = math.exp %44 : vector<16x16xf32>
    %cst_22 = arith.constant dense<0.000000e+00> : vector<16xf32>
    %46 = vector.multi_reduction <add>, %45, %cst_22 [1] : vector<16x16xf32> to vector<16xf32>
    %47 = vector.shape_cast %46 : vector<16xf32> to vector<16x1xf32>
    %48 = tpu.reciprocal %47 {approx = true} : vector<16x1xf32> -> vector<16x1xf32>
    %49 = vector.broadcast %48 : vector<16x1xf32> to vector<16x16xf32>
    %50 = arith.mulf %45, %49 : vector<16x16xf32>
    %cst_23 = arith.constant dense<0.000000e+00> : vector<16x16xf32>
    %51 = tpu.matmul %50, %38, %cst_23 {dimension_numbers = #tpu.dot_dimension_numbers<[1], [0], [0], [1], [0, 0, 1, 1], [], []>} : vector<16x16xf32>, vector<16x16xf32>, vector<16x16xf32> -> vector<16x16xf32>
    %52 = vector.extract_strided_slice %13 {offsets = [16, 0], sizes = [16, 32], strides = [1, 1]} : vector<32x32xf32> to vector<16x32xf32>
    %cst_24 = arith.constant dense<0.000000e+00> : vector<16x32xf32>
    %53 = tpu.matmul %51, %52, %cst_24 {dimension_numbers = #tpu.dot_dimension_numbers<[1], [0], [0], [1], [0, 0, 1, 1], [], []>} : vector<16x16xf32>, vector<16x32xf32>, vector<16x32xf32> -> vector<16x32xf32>
    %54 = arith.addf %33, %53 : vector<16x32xf32>
    %c0_25 = arith.constant 0 : index
    %c0_26 = arith.constant 0 : index
    %c0_27 = arith.constant 0 : index
    %55 = vector.load %arg8[%c0_25, %c0_26, %c0_27] : memref<1x1x32xf32, #tpu.memory_space<vmem>>, vector<1x1x32xf32>
    %56 = vector.shape_cast %55 : vector<1x1x32xf32> to vector<1x32xf32>
    %57 = vector.broadcast %56 : vector<1x32xf32> to vector<16x32xf32>
    %58 = arith.addf %54, %57 : vector<16x32xf32>
    %59 = arith.addf %58, %3 : vector<16x32xf32>
    %c0_28 = arith.constant 0 : index
    %c0_29 = arith.constant 0 : index
    %c0_30 = arith.constant 0 : index
    %60 = vector.load %arg9[%c0_28, %c0_29, %c0_30] : memref<1x1x32xf32, #tpu.memory_space<vmem>>, vector<1x1x32xf32>
    %61 = vector.shape_cast %60 : vector<1x1x32xf32> to vector<1x32xf32>
    %c0_31 = arith.constant 0 : index
    %c0_32 = arith.constant 0 : index
    %c0_33 = arith.constant 0 : index
    %62 = vector.load %arg10[%c0_31, %c0_32, %c0_33] : memref<1x1x32xf32, #tpu.memory_space<vmem>>, vector<1x1x32xf32>
    %63 = vector.shape_cast %62 : vector<1x1x32xf32> to vector<1x32xf32>
    %cst_34 = arith.constant dense<0.000000e+00> : vector<16xf32>
    %64 = vector.multi_reduction <add>, %59, %cst_34 [1] : vector<16x32xf32> to vector<16xf32>
    %65 = vector.shape_cast %64 : vector<16xf32> to vector<16x1xf32>
    %cst_35 = arith.constant 3.200000e+01 : f32
    %66 = vector.broadcast %cst_35 : f32 to vector<16x1xf32>
    %67 = arith.divf %65, %66 : vector<16x1xf32>
    %68 = vector.broadcast %67 : vector<16x1xf32> to vector<16x32xf32>
    %69 = arith.subf %59, %68 : vector<16x32xf32>
    %70 = vector.broadcast %67 : vector<16x1xf32> to vector<16x32xf32>
    %71 = arith.subf %59, %70 : vector<16x32xf32>
    %72 = arith.mulf %69, %71 : vector<16x32xf32>
    %cst_36 = arith.constant dense<0.000000e+00> : vector<16xf32>
    %73 = vector.multi_reduction <add>, %72, %cst_36 [1] : vector<16x32xf32> to vector<16xf32>
    %74 = vector.shape_cast %73 : vector<16xf32> to vector<16x1xf32>
    %cst_37 = arith.constant 3.200000e+01 : f32
    %75 = vector.broadcast %cst_37 : f32 to vector<16x1xf32>
    %76 = arith.divf %74, %75 : vector<16x1xf32>
    %77 = vector.broadcast %67 : vector<16x1xf32> to vector<16x32xf32>
    %78 = arith.subf %59, %77 : vector<16x32xf32>
    %cst_38 = arith.constant 9.99999996E-13 : f32
    %79 = vector.broadcast %cst_38 : f32 to vector<16x1xf32>
    %80 = arith.addf %76, %79 : vector<16x1xf32>
    %81 = math.rsqrt %80 : vector<16x1xf32>
    %82 = vector.broadcast %81 : vector<16x1xf32> to vector<16x32xf32>
    %83 = arith.mulf %78, %82 : vector<16x32xf32>
    %84 = vector.broadcast %61 : vector<1x32xf32> to vector<16x32xf32>
    %85 = arith.mulf %83, %84 : vector<16x32xf32>
    %86 = vector.broadcast %63 : vector<1x32xf32> to vector<16x32xf32>
    %87 = arith.addf %85, %86 : vector<16x32xf32>
    %c0_39 = arith.constant 0 : index
    %c0_40 = arith.constant 0 : index
    %c0_41 = arith.constant 0 : index
    %88 = vector.load %arg11[%c0_39, %c0_40, %c0_41] : memref<1x32x64xf32, #tpu.memory_space<vmem>>, vector<1x32x64xf32>
    %89 = vector.shape_cast %88 : vector<1x32x64xf32> to vector<32x64xf32>
    %cst_42 = arith.constant dense<0.000000e+00> : vector<16x64xf32>
    %90 = tpu.matmul %87, %89, %cst_42 {dimension_numbers = #tpu.dot_dimension_numbers<[1], [0], [0], [1], [0, 0, 1, 1], [], []>} : vector<16x32xf32>, vector<32x64xf32>, vector<16x64xf32> -> vector<16x64xf32>
    %c0_43 = arith.constant 0 : index
    %c0_44 = arith.constant 0 : index
    %c0_45 = arith.constant 0 : index
    %91 = vector.load %arg12[%c0_43, %c0_44, %c0_45] : memref<1x1x64xf32, #tpu.memory_space<vmem>>, vector<1x1x64xf32>
    %92 = vector.shape_cast %91 : vector<1x1x64xf32> to vector<1x64xf32>
    %93 = vector.broadcast %92 : vector<1x64xf32> to vector<16x64xf32>
    %94 = arith.addf %90, %93 : vector<16x64xf32>
    %cst_46 = arith.constant 5.000000e-01 : f32
    %95 = vector.broadcast %cst_46 : f32 to vector<16x64xf32>
    %96 = arith.mulf %95, %94 : vector<16x64xf32>
    %cst_47 = arith.constant 4.471500e-02 : f32
    %97 = vector.broadcast %cst_47 : f32 to vector<16x64xf32>
    %98 = arith.mulf %97, %94 : vector<16x64xf32>
    %99 = arith.mulf %98, %94 : vector<16x64xf32>
    %100 = arith.mulf %99, %94 : vector<16x64xf32>
    %101 = arith.addf %94, %100 : vector<16x64xf32>
    %cst_48 = arith.constant 0.797884583 : f32
    %102 = vector.broadcast %cst_48 : f32 to vector<16x64xf32>
    %103 = arith.mulf %102, %101 : vector<16x64xf32>
    %104 = math.tanh %103 : vector<16x64xf32>
    %cst_49 = arith.constant 1.000000e+00 : f32
    %105 = vector.broadcast %cst_49 : f32 to vector<16x64xf32>
    %106 = arith.addf %105, %104 : vector<16x64xf32>
    %107 = arith.mulf %96, %106 : vector<16x64xf32>
    %c0_50 = arith.constant 0 : index
    %c0_51 = arith.constant 0 : index
    %c0_52 = arith.constant 0 : index
    %108 = vector.load %arg13[%c0_50, %c0_51, %c0_52] : memref<1x64x32xf32, #tpu.memory_space<vmem>>, vector<1x64x32xf32>
    %109 = vector.shape_cast %108 : vector<1x64x32xf32> to vector<64x32xf32>
    %cst_53 = arith.constant dense<0.000000e+00> : vector<16x32xf32>
    %110 = tpu.matmul %107, %109, %cst_53 {dimension_numbers = #tpu.dot_dimension_numbers<[1], [0], [0], [1], [0, 0, 1, 1], [], []>} : vector<16x64xf32>, vector<64x32xf32>, vector<16x32xf32> -> vector<16x32xf32>
    %c0_54 = arith.constant 0 : index
    %c0_55 = arith.constant 0 : index
    %c0_56 = arith.constant 0 : index
    %111 = vector.load %arg14[%c0_54, %c0_55, %c0_56] : memref<1x1x32xf32, #tpu.memory_space<vmem>>, vector<1x1x32xf32>
    %112 = vector.shape_cast %111 : vector<1x1x32xf32> to vector<1x32xf32>
    %113 = vector.broadcast %112 : vector<1x32xf32> to vector<16x32xf32>
    %114 = arith.addf %110, %113 : vector<16x32xf32>
    %115 = arith.addf %114, %87 : vector<16x32xf32>
    %c0_57 = arith.constant 0 : index
    %c0_58 = arith.constant 0 : index
    %c0_59 = arith.constant 0 : index
    %116 = vector.load %arg15[%c0_57, %c0_58, %c0_59] : memref<1x1x32xf32, #tpu.memory_space<vmem>>, vector<1x1x32xf32>
    %117 = vector.shape_cast %116 : vector<1x1x32xf32> to vector<1x32xf32>
    %c0_60 = arith.constant 0 : index
    %c0_61 = arith.constant 0 : index
    %c0_62 = arith.constant 0 : index
    %118 = vector.load %arg16[%c0_60, %c0_61, %c0_62] : memref<1x1x32xf32, #tpu.memory_space<vmem>>, vector<1x1x32xf32>
    %119 = vector.shape_cast %118 : vector<1x1x32xf32> to vector<1x32xf32>
    %cst_63 = arith.constant dense<0.000000e+00> : vector<16xf32>
    %120 = vector.multi_reduction <add>, %115, %cst_63 [1] : vector<16x32xf32> to vector<16xf32>
    %121 = vector.shape_cast %120 : vector<16xf32> to vector<16x1xf32>
    %cst_64 = arith.constant 3.200000e+01 : f32
    %122 = vector.broadcast %cst_64 : f32 to vector<16x1xf32>
    %123 = arith.divf %121, %122 : vector<16x1xf32>
    %124 = vector.broadcast %123 : vector<16x1xf32> to vector<16x32xf32>
    %125 = arith.subf %115, %124 : vector<16x32xf32>
    %126 = vector.broadcast %123 : vector<16x1xf32> to vector<16x32xf32>
    %127 = arith.subf %115, %126 : vector<16x32xf32>
    %128 = arith.mulf %125, %127 : vector<16x32xf32>
    %cst_65 = arith.constant dense<0.000000e+00> : vector<16xf32>
    %129 = vector.multi_reduction <add>, %128, %cst_65 [1] : vector<16x32xf32> to vector<16xf32>
    %130 = vector.shape_cast %129 : vector<16xf32> to vector<16x1xf32>
    %cst_66 = arith.constant 3.200000e+01 : f32
    %131 = vector.broadcast %cst_66 : f32 to vector<16x1xf32>
    %132 = arith.divf %130, %131 : vector<16x1xf32>
    %133 = vector.broadcast %123 : vector<16x1xf32> to vector<16x32xf32>
    %134 = arith.subf %115, %133 : vector<16x32xf32>
    %cst_67 = arith.constant 9.99999996E-13 : f32
    %135 = vector.broadcast %cst_67 : f32 to vector<16x1xf32>
    %136 = arith.addf %132, %135 : vector<16x1xf32>
    %137 = math.rsqrt %136 : vector<16x1xf32>
    %138 = vector.broadcast %137 : vector<16x1xf32> to vector<16x32xf32>
    %139 = arith.mulf %134, %138 : vector<16x32xf32>
    %140 = vector.broadcast %117 : vector<1x32xf32> to vector<16x32xf32>
    %141 = arith.mulf %139, %140 : vector<16x32xf32>
    %142 = vector.broadcast %119 : vector<1x32xf32> to vector<16x32xf32>
    %143 = arith.addf %141, %142 : vector<16x32xf32>
    %c0_68 = arith.constant 0 : index
    %c0_69 = arith.constant 0 : index
    %144 = vector.load %arg30[%c0_68, %c0_69] : memref<16x32xf32, #tpu.memory_space<vmem>>, vector<16x32xf32>
    tpu.vector_store %arg30[%c0_68, %c0_69], %143 {strides = array<i32>} : memref<16x32xf32, #tpu.memory_space<vmem>>, vector<16x32xf32>,
    %c1_i32 = arith.constant 1 : i32
    %145 = arith.cmpi eq, %arg0, %c1_i32 : i32
    %146 = arith.extui %145 : i1 to i32
    %c0_i32_70 = arith.constant 0 : i32
    %147 = arith.cmpi ne, %146, %c0_i32_70 : i32
    scf.if %147 {
      %148 = tpu.iota {dimensions = array<i32: 1>} : vector<2x16xi32>
      %149 = tpu.iota {dimensions = array<i32: 0>} : vector<2x16xi32>
      %c8_i32 = arith.constant 8 : i32
      %150 = vector.broadcast %c8_i32 : i32 to vector<2x16xi32>
      %151 = arith.muli %149, %150 : vector<2x16xi32>
      %152 = arith.cmpi eq, %148, %151 : vector<2x16xi32>
      %153 = arith.extui %152 : vector<2x16xi1> to vector<2x16xi32>
      %154 = arith.sitofp %153 : vector<2x16xi32> to vector<2x16xf32>
      %cst_71 = arith.constant dense<0.000000e+00> : vector<2x32xf32>
      %155 = tpu.matmul %154, %143, %cst_71 {dimension_numbers = #tpu.dot_dimension_numbers<[1], [0], [0], [1], [0, 0, 1, 1], [], []>} : vector<2x16xf32>, vector<16x32xf32>, vector<2x32xf32> -> vector<2x32xf32>
      %c0_72 = arith.constant 0 : index
      %c0_73 = arith.constant 0 : index
      %156 = vector.load %arg17[%c0_72, %c0_73] : memref<32x32xf32, #tpu.memory_space<vmem>>, vector<32x32xf32>
      %cst_74 = arith.constant dense<0.000000e+00> : vector<2x32xf32>
      %157 = tpu.matmul %155, %156, %cst_74 {dimension_numbers = #tpu.dot_dimension_numbers<[1], [0], [0], [1], [0, 0, 1, 1], [], []>} : vector<2x32xf32>, vector<32x32xf32>, vector<2x32xf32> -> vector<2x32xf32>
      %c0_75 = arith.constant 0 : index
      %c0_76 = arith.constant 0 : index
      %158 = vector.load %arg18[%c0_75, %c0_76] : memref<1x32xf32, #tpu.memory_space<vmem>>, vector<1x32xf32>
      %159 = vector.broadcast %158 : vector<1x32xf32> to vector<2x32xf32>
      %160 = arith.addf %157, %159 : vector<2x32xf32>
      %161 = math.tanh %160 : vector<2x32xf32>
      %c0_77 = arith.constant 0 : index
      %c0_78 = arith.constant 0 : index
      %162 = vector.load %arg19[%c0_77, %c0_78] : memref<32x32xf32, #tpu.memory_space<vmem>>, vector<32x32xf32>
      %cst_79 = arith.constant dense<0.000000e+00> : vector<2x32xf32>
      %163 = tpu.matmul %161, %162, %cst_79 {dimension_numbers = #tpu.dot_dimension_numbers<[1], [0], [0], [1], [0, 0, 1, 1], [], []>} : vector<2x32xf32>, vector<32x32xf32>, vector<2x32xf32> -> vector<2x32xf32>
      %c0_80 = arith.constant 0 : index
      %c0_81 = arith.constant 0 : index
      %164 = vector.load %arg20[%c0_80, %c0_81] : memref<1x32xf32, #tpu.memory_space<vmem>>, vector<1x32xf32>
      %165 = vector.broadcast %164 : vector<1x32xf32> to vector<2x32xf32>
      %166 = arith.addf %163, %165 : vector<2x32xf32>
      %c0_82 = arith.constant 0 : index
      %c0_83 = arith.constant 0 : index
      %167 = vector.load %arg21[%c0_82, %c0_83] : memref<1x32xf32, #tpu.memory_space<vmem>>, vector<1x32xf32>
      %168 = vector.broadcast %167 : vector<1x32xf32> to vector<2x32xf32>
      %169 = arith.mulf %166, %168 : vector<2x32xf32>
      %c0_84 = arith.constant 0 : index
      %c0_85 = arith.constant 0 : index
      %170 = vector.load %arg22[%c0_84, %c0_85] : memref<1x32xf32, #tpu.memory_space<vmem>>, vector<1x32xf32>
      %171 = vector.broadcast %170 : vector<1x32xf32> to vector<2x32xf32>
      %172 = arith.addf %169, %171 : vector<2x32xf32>
      %cst_86 = arith.constant 0.000000e+00 : f32
      %173 = vector.broadcast %cst_86 : f32 to vector<2x32xf32>
      %174 = arith.maximumf %172, %173 : vector<2x32xf32>
      %c0_87 = arith.constant 0 : index
      %c0_88 = arith.constant 0 : index
      %175 = vector.load %arg23[%c0_87, %c0_88] : memref<32x16xf32, #tpu.memory_space<vmem>>, vector<32x16xf32>
      %cst_89 = arith.constant dense<0.000000e+00> : vector<2x16xf32>
      %176 = tpu.matmul %174, %175, %cst_89 {dimension_numbers = #tpu.dot_dimension_numbers<[1], [0], [0], [1], [0, 0, 1, 1], [], []>} : vector<2x32xf32>, vector<32x16xf32>, vector<2x16xf32> -> vector<2x16xf32>
      %c0_90 = arith.constant 0 : index
      %c0_91 = arith.constant 0 : index
      %177 = vector.load %arg24[%c0_90, %c0_91] : memref<1x16xf32, #tpu.memory_space<vmem>>, vector<1x16xf32>
      %178 = vector.broadcast %177 : vector<1x16xf32> to vector<2x16xf32>
      %179 = arith.addf %176, %178 : vector<2x16xf32>
      %c0_92 = arith.constant 0 : index
      %c0_93 = arith.constant 0 : index
      %180 = vector.load %arg25[%c0_92, %c0_93] : memref<1x16xf32, #tpu.memory_space<vmem>>, vector<1x16xf32>
      %181 = vector.broadcast %180 : vector<1x16xf32> to vector<2x16xf32>
      %182 = arith.mulf %179, %181 : vector<2x16xf32>
      %c0_94 = arith.constant 0 : index
      %c0_95 = arith.constant 0 : index
      %183 = vector.load %arg26[%c0_94, %c0_95] : memref<1x16xf32, #tpu.memory_space<vmem>>, vector<1x16xf32>
      %184 = vector.broadcast %183 : vector<1x16xf32> to vector<2x16xf32>
      %185 = arith.addf %182, %184 : vector<2x16xf32>
      %cst_96 = arith.constant 0.000000e+00 : f32
      %186 = vector.broadcast %cst_96 : f32 to vector<2x16xf32>
      %187 = arith.maximumf %185, %186 : vector<2x16xf32>
      %c0_97 = arith.constant 0 : index
      %c0_98 = arith.constant 0 : index
      %188 = vector.load %arg27[%c0_97, %c0_98] : memref<16x3xf32, #tpu.memory_space<vmem>>, vector<16x3xf32>
      %cst_99 = arith.constant dense<0.000000e+00> : vector<2x3xf32>
      %189 = tpu.matmul %187, %188, %cst_99 {dimension_numbers = #tpu.dot_dimension_numbers<[1], [0], [0], [1], [0, 0, 1, 1], [], []>} : vector<2x16xf32>, vector<16x3xf32>, vector<2x3xf32> -> vector<2x3xf32>
      %c0_100 = arith.constant 0 : index
      %c0_101 = arith.constant 0 : index
      %190 = vector.load %arg28[%c0_100, %c0_101] : memref<1x3xf32, #tpu.memory_space<vmem>>, vector<1x3xf32>
      %191 = vector.broadcast %190 : vector<1x3xf32> to vector<2x3xf32>
      %192 = arith.addf %189, %191 : vector<2x3xf32>
      %c0_102 = arith.constant 0 : index
      %c0_103 = arith.constant 0 : index
      %193 = vector.load %arg29[%c0_102, %c0_103] : memref<2x3xf32, #tpu.memory_space<vmem>>, vector<2x3xf32>
      tpu.vector_store %arg29[%c0_102, %c0_103], %192 {strides = array<i32>} : memref<2x3xf32, #tpu.memory_space<vmem>>, vector<2x3xf32>,
    } else {
    }
    return
  }
  func.func @transform_0(%arg0: i32) -> (i32, i32) {
    %c0_i32 = arith.constant 0 : i32
    %c0_i32_0 = arith.constant 0 : i32
    %c0_i32_1 = arith.constant 0 : i32
    return %c0_i32, %c0_i32_0 : i32, i32
  }
  func.func @transform_1(%arg0: i32) -> (i32, i32) {
    %c0_i32 = arith.constant 0 : i32
    %c0_i32_0 = arith.constant 0 : i32
    %c0_i32_1 = arith.constant 0 : i32
    return %c0_i32, %c0_i32_0 : i32, i32
  }
  func.func @transform_2(%arg0: i32) -> (i32, i32) {
    %c0_i32 = arith.constant 0 : i32
    %c0_i32_0 = arith.constant 0 : i32
    %c0_i32_1 = arith.constant 0 : i32
    return %c0_i32, %c0_i32_0 : i32, i32
  }
  func.func @transform_3(%arg0: i32) -> (i32, i32) {
    %c0_i32 = arith.constant 0 : i32
    %c0_i32_0 = arith.constant 0 : i32
    %c0_i32_1 = arith.constant 0 : i32
    return %c0_i32, %c0_i32_0 : i32, i32
  }
  func.func @transform_4(%arg0: i32) -> (i32, i32, i32) {
    %c0_i32 = arith.constant 0 : i32
    %c0_i32_0 = arith.constant 0 : i32
    %c0_i32_1 = arith.constant 0 : i32
    return %arg0, %c0_i32, %c0_i32_0 : i32, i32, i32
  }
  func.func @transform_5(%arg0: i32) -> (i32, i32, i32) {
    %c0_i32 = arith.constant 0 : i32
    %c0_i32_0 = arith.constant 0 : i32
    %c0_i32_1 = arith.constant 0 : i32
    return %arg0, %c0_i32, %c0_i32_0 : i32, i32, i32
  }
  func.func @transform_6(%arg0: i32) -> (i32, i32, i32) {
    %c0_i32 = arith.constant 0 : i32
    %c0_i32_0 = arith.constant 0 : i32
    %c0_i32_1 = arith.constant 0 : i32
    return %arg0, %c0_i32, %c0_i32_0 : i32, i32, i32
  }
  func.func @transform_7(%arg0: i32) -> (i32, i32, i32) {
    %c0_i32 = arith.constant 0 : i32
    %c0_i32_0 = arith.constant 0 : i32
    %c0_i32_1 = arith.constant 0 : i32
    return %arg0, %c0_i32, %c0_i32_0 : i32, i32, i32
  }
  func.func @transform_8(%arg0: i32) -> (i32, i32, i32) {
    %c0_i32 = arith.constant 0 : i32
    %c0_i32_0 = arith.constant 0 : i32
    %c0_i32_1 = arith.constant 0 : i32
    return %arg0, %c0_i32, %c0_i32_0 : i32, i32, i32
  }
  func.func @transform_9(%arg0: i32) -> (i32, i32, i32) {
    %c0_i32 = arith.constant 0 : i32
    %c0_i32_0 = arith.constant 0 : i32
    %c0_i32_1 = arith.constant 0 : i32
    return %arg0, %c0_i32, %c0_i32_0 : i32, i32, i32
  }
  func.func @transform_10(%arg0: i32) -> (i32, i32, i32) {
    %c0_i32 = arith.constant 0 : i32
    %c0_i32_0 = arith.constant 0 : i32
    %c0_i32_1 = arith.constant 0 : i32
    return %arg0, %c0_i32, %c0_i32_0 : i32, i32, i32
  }
  func.func @transform_11(%arg0: i32) -> (i32, i32, i32) {
    %c0_i32 = arith.constant 0 : i32
    %c0_i32_0 = arith.constant 0 : i32
    %c0_i32_1 = arith.constant 0 : i32
    return %arg0, %c0_i32, %c0_i32_0 : i32, i32, i32
  }
  func.func @transform_12(%arg0: i32) -> (i32, i32, i32) {
    %c0_i32 = arith.constant 0 : i32
    %c0_i32_0 = arith.constant 0 : i32
    %c0_i32_1 = arith.constant 0 : i32
    return %arg0, %c0_i32, %c0_i32_0 : i32, i32, i32
  }
  func.func @transform_13(%arg0: i32) -> (i32, i32, i32) {
    %c0_i32 = arith.constant 0 : i32
    %c0_i32_0 = arith.constant 0 : i32
    %c0_i32_1 = arith.constant 0 : i32
    return %arg0, %c0_i32, %c0_i32_0 : i32, i32, i32
  }
  func.func @transform_14(%arg0: i32) -> (i32, i32, i32) {
    %c0_i32 = arith.constant 0 : i32
    %c0_i32_0 = arith.constant 0 : i32
    %c0_i32_1 = arith.constant 0 : i32
    return %arg0, %c0_i32, %c0_i32_0 : i32, i32, i32
  }
  func.func @transform_15(%arg0: i32) -> (i32, i32, i32) {
    %c0_i32 = arith.constant 0 : i32
    %c0_i32_0 = arith.constant 0 : i32
    %c0_i32_1 = arith.constant 0 : i32
    return %arg0, %c0_i32, %c0_i32_0 : i32, i32, i32
  }
  func.func @transform_16(%arg0: i32) -> (i32, i32) {
    %c0_i32 = arith.constant 0 : i32
    %c0_i32_0 = arith.constant 0 : i32
    %c0_i32_1 = arith.constant 0 : i32
    return %c0_i32, %c0_i32_0 : i32, i32
  }
  func.func @transform_17(%arg0: i32) -> (i32, i32) {
    %c0_i32 = arith.constant 0 : i32
    %c0_i32_0 = arith.constant 0 : i32
    %c0_i32_1 = arith.constant 0 : i32
    return %c0_i32, %c0_i32_0 : i32, i32
  }
  func.func @transform_18(%arg0: i32) -> (i32, i32) {
    %c0_i32 = arith.constant 0 : i32
    %c0_i32_0 = arith.constant 0 : i32
    %c0_i32_1 = arith.constant 0 : i32
    return %c0_i32, %c0_i32_0 : i32, i32
  }
  func.func @transform_19(%arg0: i32) -> (i32, i32) {
    %c0_i32 = arith.constant 0 : i32
    %c0_i32_0 = arith.constant 0 : i32
    %c0_i32_1 = arith.constant 0 : i32
    return %c0_i32, %c0_i32_0 : i32, i32
  }
  func.func @transform_20(%arg0: i32) -> (i32, i32) {
    %c0_i32 = arith.constant 0 : i32
    %c0_i32_0 = arith.constant 0 : i32
    %c0_i32_1 = arith.constant 0 : i32
    return %c0_i32, %c0_i32_0 : i32, i32
  }
  func.func @transform_21(%arg0: i32) -> (i32, i32) {
    %c0_i32 = arith.constant 0 : i32
    %c0_i32_0 = arith.constant 0 : i32
    %c0_i32_1 = arith.constant 0 : i32
    return %c0_i32, %c0_i32_0 : i32, i32
  }
  func.func @transform_22(%arg0: i32) -> (i32, i32) {
    %c0_i32 = arith.constant 0 : i32
    %c0_i32_0 = arith.constant 0 : i32
    %c0_i32_1 = arith.constant 0 : i32
    return %c0_i32, %c0_i32_0 : i32, i32
  }
  func.func @transform_23(%arg0: i32) -> (i32, i32) {
    %c0_i32 = arith.constant 0 : i32
    %c0_i32_0 = arith.constant 0 : i32
    %c0_i32_1 = arith.constant 0 : i32
    return %c0_i32, %c0_i32_0 : i32, i32
  }
  func.func @transform_24(%arg0: i32) -> (i32, i32) {
    %c0_i32 = arith.constant 0 : i32
    %c0_i32_0 = arith.constant 0 : i32
    %c0_i32_1 = arith.constant 0 : i32
    return %c0_i32, %c0_i32_0 : i32, i32
  }
  func.func @transform_25(%arg0: i32) -> (i32, i32) {
    %c0_i32 = arith.constant 0 : i32
    %c0_i32_0 = arith.constant 0 : i32
    %c0_i32_1 = arith.constant 0 : i32
    return %c0_i32, %c0_i32_0 : i32, i32
  }
  func.func @transform_26(%arg0: i32) -> (i32, i32) {
    %c0_i32 = arith.constant 0 : i32
    %c0_i32_0 = arith.constant 0 : i32
    %c0_i32_1 = arith.constant 0 : i32
    return %c0_i32, %c0_i32_0 : i32, i32
  }
  func.func @transform_27(%arg0: i32) -> (i32, i32) {
    %c0_i32 = arith.constant 0 : i32
    %c0_i32_0 = arith.constant 0 : i32
    %c0_i32_1 = arith.constant 0 : i32
    return %c0_i32, %c0_i32_0 : i32, i32
  }
  func.func @transform_28(%arg0: i32) -> (i32, i32) {
    %c0_i32 = arith.constant 0 : i32
    %c0_i32_0 = arith.constant 0 : i32
    %c0_i32_1 = arith.constant 0 : i32
    return %c0_i32, %c0_i32_0 : i32, i32
  }
}

</mosaic_0001>

<bundles_post_ra>
// kernel: forward.1
= control target key start
LH: loop header
LB: loop body
LE: loop exit
PB: predicated region body
PF: predicated region fallthrough
CT: control target
= control target key end

     0   :  { %s2568_s0 = inlined_call_operand.vmem [shape: f32[16,32], index: 0, kind: input, shape index: {}]   ;;  %s2569_s1 = inlined_call_operand.vmem [shape: f32[1,32], index: 1, kind: input, shape index: {}]   ;;  %s2570_s2 = inlined_call_operand.vmem [shape: f32[1,32], index: 2, kind: input, shape index: {}]   ;;  %s2571_s3 = inlined_call_operand.vmem [shape: f32[16,16], index: 3, kind: input, shape index: {}]   ;;  %s2572_s4 = inlined_call_operand.vmem [shape: f32[2,32,96], index: 4, kind: input, shape index: {}]   ;;  %s2573_s5 = inlined_call_operand.vmem [shape: f32[2,1,96], index: 5, kind: input, shape index: {}]   ;;  %s2574_s6 = inlined_call_operand.vmem [shape: f32[2,32,32], index: 6, kind: input, shape index: {}]   ;;  %s2575_s7 = inlined_call_operand.vmem [shape: f32[2,1,32], index: 7, kind: input, shape index: {}]   ;;  %s2576_s8 = inlined_call_operand.vmem [shape: f32[2,1,32], index: 8, kind: input, shape index: {}]   ;;  %s2577_s9 = inlined_call_operand.vmem [shape: f32[2,1,32], index: 9, kind: input, shape index: {}]   ;;  %s2578_s10 = inlined_call_operand.vmem [shape: f32[2,32,64], index: 10, kind: input, shape index: {}]   ;;  %s2579_s11 = inlined_call_operand.vmem [shape: f32[2,1,64], index: 11, kind: input, shape index: {}]   ;;  %s2580_s12 = inlined_call_operand.vmem [shape: f32[2,64,32], index: 12, kind: input, shape index: {}]   ;;  %s2581_s13 = inlined_call_operand.vmem [shape: f32[2,1,32], index: 13, kind: input, shape index: {}]   ;;  %s2582_s14 = inlined_call_operand.vmem [shape: f32[2,1,32], index: 14, kind: input, shape index: {}]   ;;  %s2583_s15 = inlined_call_operand.vmem [shape: f32[2,1,32], index: 15, kind: input, shape index: {}]   ;;  %s2584_s16 = inlined_call_operand.vmem [shape: f32[32,32], index: 16, kind: input, shape index: {}]   ;;  %s2585_s17 = inlined_call_operand.vmem [shape: f32[1,32], index: 17, kind: input, shape index: {}]   ;;  %s2586_s18 = inlined_call_operand.vmem [shape: f32[32,32], index: 18, kind: input, shape index: {}]   ;;  %s2587_s19 = inlined_call_operand.vmem [shape: f32[1,32], index: 19, kind: input, shape index: {}]   ;;  %s2588_s20 = inlined_call_operand.vmem [shape: f32[1,32], index: 20, kind: input, shape index: {}]   ;;  %s2589_s21 = inlined_call_operand.vmem [shape: f32[1,32], index: 21, kind: input, shape index: {}]   ;;  %s2590_s22 = inlined_call_operand.vmem [shape: f32[32,16], index: 22, kind: input, shape index: {}]   ;;  %s2591_s23 = inlined_call_operand.vmem [shape: f32[1,16], index: 23, kind: input, shape index: {}]   ;;  %s2592_s24 = inlined_call_operand.vmem [shape: f32[1,16], index: 24, kind: input, shape index: {}]   ;;  %s2593_s25 = inlined_call_operand.vmem [shape: f32[1,16], index: 25, kind: input, shape index: {}]   ;;  %s2594_s26 = inlined_call_operand.vmem [shape: f32[16,3], index: 26, kind: input, shape index: {}]   ;;  %s2595_s27 = inlined_call_operand.vmem [shape: f32[1,3], index: 27, kind: input, shape index: {}]   ;;  %s2596_s28 = inlined_call_operand.hbm [shape: f32[2,3], index: 28, kind: output, shape index: {}]  }
   0x1   :  { %2602 = sst [smem:[#allocation7_spill]] %s2568_s0 }
   0x2   :  { %2603 = sst [smem:[#allocation8_spill]] %s2569_s1 }
   0x3   :  { %2604 = sst [smem:[#allocation9_spill]] %s2570_s2 }
   0x4   :  { %2605 = sst [smem:[#allocation10_spill]] %s2571_s3 }
   0x5   :  { %2606 = sst [smem:[#allocation11_spill]] %s2572_s4 }
   0x6   :  { %2607 = sst [smem:[#allocation12_spill]] %s2573_s5 }
   0x7   :  { %2608 = sst [smem:[#allocation13_spill]] %s2574_s6 }
   0x8   :  { %2609 = sst [smem:[#allocation14_spill]] %s2575_s7 }
   0x9   :  { %2610 = sst [smem:[#allocation15_spill]] %s2576_s8 }
   0xa   :  { %2611 = sst [smem:[#allocation16_spill]] %s2577_s9 }
   0xb   :  { %2612 = sst [smem:[#allocation17_spill]] %s2578_s10 }
   0xc   :  { %2613 = sst [smem:[#allocation18_spill]] %s2579_s11 }
   0xd   :  { %2614 = sst [smem:[#allocation19_spill]] %s2580_s12 }
   0xe   :  { %2615 = sst [smem:[#allocation20_spill]] %s2585_s17 }
   0xf   :  { %2616 = sst [smem:[#allocation21_spill]] %s2587_s19 }
  0x10   :  { %2617 = sst [smem:[#allocation22_spill]] %s2588_s20 }
  0x11   :  { %2618 = sst [smem:[#allocation23_spill]] %s2589_s21 }
  0x12   :  { %2619 = sst [smem:[#allocation24_spill]] %s2590_s22 }
  0x13   :  { %2620 = sst [smem:[#allocation25_spill]] %s2591_s23 }
  0x14   :  { %2621 = sst [smem:[#allocation26_spill]] %s2592_s24 }
  0x15   :  { %2622 = sst [smem:[#allocation27_spill]] %s2593_s25 }
  0x16   :  { %2623 = sst [smem:[#allocation28_spill]] %s2594_s26 }
  0x17   :  { %2624 = sst [smem:[#allocation29_spill]] %s2595_s27 }
  0x18   :  { %2625 = sst [smem:[#allocation30_spill]] %s2596_s28 }
  0x19   :  { %33 = vsyncpa [#allocation4], 0  ;;  %s2276_s8 = smov 0  }
  0x1a LB: > { %2626 = sst [smem:[#allocation6_spill]] %s2120_s8  ;;  %s2282_s5 = sadd.s32 4294967295, %s2120_s8   ;;  %s2120_s8 = sphi %s2276_s8, %s39_s8  }
  0x1b   : > { %p1944_p0 = scmp.ge.s32.totalorder %s2120_s8, 1  ;;  %p852_p1 = scmp.lt.s32.totalorder %s2120_s8, 3 }
  0x1d   : > { %p853_p2 = pnand %p1944_p0, %p852_p1 }
  0x1e   : > { %p960_p3 = scmp.lt.s32.totalorder (!%p853_p2), %s2282_s5, 1  ;;  %s2628_s2 = sld [smem:[#allocation11_spill]] (!%p853_p2) }
  0x1f   : > { %856 = sbr.rel (%p853_p2) target bundleno = 2784 (0xae0), region = 132  ;;  %s2629_s4 = sld [smem:[#allocation13_spill]] (!%p853_p2) }
  0x20   : > { %s2631_s21 = sld [smem:[#allocation15_spill]] (!%p853_p2)  ;;  %p1953_p4 = scmp.ne.s32.totalorder (!%p853_p2), %s2282_s5, 0 }
  0x21   : > { %s2632_s10 = sld [smem:[#allocation16_spill]] (!%p853_p2) }
  0x22   : > { %s2635_s28 = sld [smem:[#allocation19_spill]] (!%p853_p2) }
  0x24   : > { %s2288_s9 = scalar_select %p960_p3, %s2282_s5, 1 }
  0x25   : > { %s2636_s1 = sld [smem:[#allocation7_spill]] (!%p1953_p4) }
  0x26   : > { %s1987_s30 = sshll.u32 %s2288_s9, 5  ;;  %s978_s20 = scalar_lea.vmem %s2631_s21, %s2288_s9 }
  0x27   : > { %s2298_s7 = scalar_lea.vmem %s2628_s2, %s1987_s30  ;;  %s2303_s8 = scalar_lea.vmem %s2629_s4, %s1987_s30 }
  0x28   : > { %s981_s0 = scalar_lea.vmem %s2632_s10, %s2288_s9  ;;  %s2633_s2 = sld [smem:[#allocation17_spill]] }
  0x29   : > { %s2634_s4 = sld [smem:[#allocation18_spill]]  ;;  %s1990_s17 = sshll.u32 %s2288_s9, 6 }
  0x2a   : > { %s2330_s24 = scalar_lea.vmem %s2635_s28, %s1990_s17  ;;  %s997_s26 = scalar_lea.vmem %s2581_s13, %s2288_s9 }
  0x2b   : > { %s1000_s10 = scalar_lea.vmem %s2582_s14, %s2288_s9  ;;  %s1003_s29 = scalar_lea.vmem %s2583_s15, %s2288_s9 }
  0x2c   : > { %1007 = sbr.rel (%p1953_p4) target bundleno = 327 (0x147), region = 136  ;;  %s2637_s28 = sld [smem:[#allocation8_spill]] (!%p1953_p4) }
  0x2d   : > { %s2638_s3 = sld [smem:[#allocation9_spill]] (!%p1953_p4) }
  0x2e   : > { %s2320_s19 = scalar_lea.vmem %s2633_s2, %s1987_s30 }
  0x2f   : > { %s989_s22 = scalar_lea.vmem %s2634_s4, %s2288_s9 }
  0x31   : > { %v1008_v0 = vld [vmem:[%s2636_s1] sm:$0xff]  ;;  %vm1012_vm0 = vcmask 261120   ;;  %v1009_v2 = vld [vmem:[%s2636_s1 + $0x8] sm:$0xff]  ;;  %v2122_v4 = vmov 32.0  }
  0x32   : > { %v1013_v1 = vsel %vm1012_vm0, %v1008_v0, 0.0  ;;  %v1016_v3 = vsel %vm1012_vm0, %v1009_v2, 0.0  ;;  %2018 = vrcp.f32 %v2122_v4  ;;  %v2016_v35 = vld [vmem:[%s2637_s28] ss:$0 sm:$0xff] }
  0x33   : > { %1014 = vadd.xlane.f32.xlu0 %v1013_v1  ;;  %v2017_v38 = vld [vmem:[%s2638_s3] ss:$0 sm:$0xff] }
  0x38   : > { %v2019_v5 = vpop.eup %2018 }
  0x39   : > { %v1020_v6 = vmul.f32 32.0, %v2019_v5  ;;  %vm1024_vm1 = vweird.f32 %v2019_v5 }
  0x3b   : > { %1017 = vadd.xlane.f32.xlu0 %v1016_v3  ;;  %v1021_v7 = vsub.f32 1.0, %v1020_v6 }
  0x3d   : > { %v1022_v8 = vmul.f32 %v2019_v5, %v1021_v7 }
  0x3f   : > { %v1023_v9 = vadd.f32 %v2019_v5, %v1022_v8 }
  0x41   : > { %v1025_v10 = vsel %vm1024_vm1, %v2019_v5, %v1023_v9 }
  0xa6   : > { %v1015_v11 = vpop.xlane.xlu0 %1014 }
  0xa7   : > { %v1026_v12 = vmul.f32 %v1025_v10, %v1015_v11 }
  0xa9   : > { %v1028_v13 = vsub.f32 %v1008_v0, %v1026_v12 }
  0xab   : > { %v1030_v14 = vmul.f32 %v1028_v13, %v1028_v13 }
  0xad   : > { %v1032_v15 = vsel %vm1012_vm0, %v1030_v14, 0.0 }
  0xae   : > { %1033 = vadd.xlane.f32.xlu1 %v1032_v15  ;;  %v1018_v16 = vpop.xlane.xlu0 %1017 }
  0xaf   : > { %v1027_v17 = vmul.f32 %v1025_v10, %v1018_v16 }
  0xb1   : > { %v1029_v18 = vsub.f32 %v1009_v2, %v1027_v17 }
  0xb3   : > { %v1031_v19 = vmul.f32 %v1029_v18, %v1029_v18 }
  0xb5   : > { %v1035_v20 = vsel %vm1012_vm0, %v1031_v19, 0.0 }
  0xb6   : > { %1036 = vadd.xlane.f32.xlu1 %v1035_v20 }
 0x121   : > { %v1034_v21 = vpop.xlane.xlu1 %1033 }
 0x122   : > { %v1038_v22 = vmul.f32 %v1034_v21, %v1025_v10 }
 0x124   : > { %v1040_v23 = vadd.f32 1e-12, %v1038_v22 }
 0x126   : > { %2020 = vrsqrt.f32 %v1040_v23  ;;  %vm1048_vm3 = vweird.f32 %v1040_v23 }
 0x129   : > { %v1037_v24 = vpop.xlane.xlu1 %1036 }
 0x12a   : > { %v1039_v25 = vmul.f32 %v1037_v24, %v1025_v10 }
 0x12c   : > { %v2021_v26 = vpop.eup %2020  ;;  %v1041_v27 = vadd.f32 1e-12, %v1039_v25 }
 0x12d   : > { %v1043_v28 = vmul.f32 %v2021_v26, %v1040_v23  ;;  %vm1049_vm2 = vweird.f32 %v2021_v26 }
 0x12e   : > { %2022 = vrsqrt.f32 %v1041_v27  ;;  %vm1050_vm4 = vmor %vm1048_vm3, %vm1049_vm2  ;;  %vm1058_vm6 = vweird.f32 %v1041_v27 }
 0x12f   : > { %v1044_v29 = vmul.f32 %v2021_v26, %v1043_v28 }
 0x131   : > { %v1045_v30 = vmul.f32 0.5, %v1044_v29 }
 0x133   : > { %v1046_v31 = vsub.f32 1.5, %v1045_v30 }
 0x134   : > { %v2023_v32 = vpop.eup %2022 }
 0x135   : > { %v1047_v33 = vmul.f32 %v2021_v26, %v1046_v31  ;;  %v1053_v34 = vmul.f32 %v2023_v32, %v1041_v27  ;;  %vm1059_vm5 = vweird.f32 %v2023_v32 }
 0x136   : > { %vm1060_vm7 = vmor %vm1058_vm6, %vm1059_vm5 }
 0x137   : > { %v1051_v36 = vsel %vm1050_vm4, %v2021_v26, %v1047_v33  ;;  %v1054_v37 = vmul.f32 %v2023_v32, %v1053_v34 }
 0x138   : > { %v1062_v39 = vmul.f32 %v1051_v36, %v1028_v13 }
 0x139   : > { %v1055_v40 = vmul.f32 0.5, %v1054_v37 }
 0x13a   : > { %v1067_v41 = vmul.f32 %v2016_v35, %v1062_v39 }
 0x13b   : > { %v1056_v42 = vsub.f32 1.5, %v1055_v40 }
 0x13c   : > { %v1072_v43 = vadd.f32 %v2017_v38, %v1067_v41 }
 0x13d   : > { %v1057_v44 = vmul.f32 %v2023_v32, %v1056_v42 }
 0x13e   : > { %1074 = vst.msk [vmem:[#allocation2] sm:$0xff] %vm1012_vm0, %v1072_v43 }
 0x13f   : > { %v1061_v45 = vsel %vm1060_vm7, %v2023_v32, %v1057_v44 }
 0x140   : > { %v1063_v46 = vmul.f32 %v1061_v45, %v1029_v18 }
 0x142   : > { %v1068_v47 = vmul.f32 %v2016_v35, %v1063_v46 }
 0x144   : > { %v1073_v48 = vadd.f32 %v2017_v38, %v1068_v47 }
 0x146   : > { %1075 = vst.msk [vmem:[#allocation2 + $0x8] sm:$0xff] %vm1012_vm0, %v1073_v48 }
 0x147 PF: > { %v1083_v49 = vld [vmem:[%s2298_s7 + $0x18] sm:$0xff]  ;;  %v1082_v50 = vld [vmem:[%s2298_s7 + $0x10] sm:$0xff]  ;;  %v1081_v51 = vld [vmem:[%s2298_s7 + $0x8] sm:$0xff]  ;;  %vm1088_vm8 = vcmask 261120   ;;  %s2639_s11 = sld [smem:[#allocation12_spill]]  ;;  %s2124_s12 = smov 80  }
 0x148   : > { %1107 = vmatpush.msra.mxu0 %v1083_v49  ;;  %v1080_v52 = vld [vmem:[%s2298_s7] sm:$0xff]  ;;  %s2123_s7 = smov 112   ;;  %s2125_s17 = smov 96   ;;  %vm1130_vm9 = vcmask 130048   ;;  %v1119_v42 = vld [vmem:[%s2303_s8 + $0x8] sm:$0xff]  ;;  %vm1513_vm1 = vcmask 523264  }
 0x149   : > { %v2367_v53 = vld [vmem:[#allocation2] sm:$0xff]  ;;  %s2641_s25 = sld [smem:[#allocation10_spill]]  ;;  %s2126_s23 = smov 64  }
 0x14a   : > { %1108 = vmatpush.msra.mxu0 %v1082_v50  ;;  %s2127_s3 = smov 48   ;;  %p1976_p5 = scmp.ne.s32.totalorder %s2282_s5, 1 }
 0x14b   : > { %s2648_s21 = sld [smem:[#allocation24_spill]] (!%p1976_p5) }
 0x14c   : > { %1109 = vmatpush.msra.mxu0 %v1081_v51  ;;  %s2651_s4 = sld [smem:[#allocation23_spill]] (!%p1976_p5) }
 0x14d   : > { %v2371_v54 = vld [vmem:[#allocation2 + $0x8] sm:$0xff]  ;;  %s2640_s2 = scalar_lea.vmem %s2639_s11, %s2288_s9  ;;  %s2642_s11 = sld [smem:[#allocation14_spill]] }
 0x14e   : > { %1110 = vmatpush.msra.mxu0 %v1080_v52  ;;  %v2034_v55 = vld [vmem:[%s2640_s2] ss:$0 sm:$0xff]  ;;  %s2652_s27 = sld [smem:[#allocation28_spill]] (!%p1976_p5) }
 0x14f   : > { %1954 = vmatmul.msk.f32.vlgmr.msra.gmra.mxu0 %vm1088_vm8, %v2367_v53  ;;  %v1078_v5 = vld [vmem:[%s2641_s25] sm:$0xff]  ;;  %v1079_v10 = vld [vmem:[%s2641_s25 + $0x8] sm:$0xff]  ;;  %s2655_s30 = sld [smem:[#allocation27_spill]] (!%p1976_p5) }
 0x153   : > { %s2643_s2 = scalar_lea.vmem %s2642_s11, %s2288_s9 }
 0x157   : > { %1955 = vmatmul.msk.f32.gmra.mxu0 %vm1088_vm8, %v2371_v54 }
 0x1cc   : > { %v1112_v56 = vpop.f32.mrf.mxu0 }
 0x1cd   : > { %v1113_v57 = vadd.f32 %v2034_v55, %v1112_v56 }
 0x1cf   : > { %v1122_v58 = vmul.f32 0.25, %v1113_v57 }
 0x1d1   : > { %1221 = vrot.lane.b32.xlu2 %v1122_v58, %s2123_s7 }
 0x1d4   : > { %v1115_v59 = vpop.f32.mrf.mxu0 }
 0x1d5   : > { %v1116_v60 = vadd.f32 %v2034_v55, %v1115_v59 }
 0x1d7   : > { %1227 = vrot.lane.b32.xlu1 %v1116_v60, %s2124_s12  ;;  %1128 = vrot.lane.b32.xlu0 %v1116_v60, %s2125_s17  ;;  %v1123_v61 = vmul.f32 0.25, %v1116_v60  ;;  %v2380_v62 = vpack.i.bf16 %v1113_v57, %v1116_v60  ;;  %v1121_v60 = vld [vmem:[%s2303_s8 + $0x18] sm:$0xff] }
 0x1d9   : > { %1223 = vrot.lane.b32.xlu2 %v1123_v61, %s2123_s7  ;;  %s2650_s7 = sld [smem:[#allocation22_spill]] (!%p1976_p5) }
 0x1df   : > { %1225 = vrot.lane.b32.xlu1 %v1113_v57, %s2124_s12  ;;  %1126 = vrot.lane.b32.xlu0 %v1113_v57, %s2125_s17 }
 0x22b   : > { %v1222_v3 = vpop.permute.xlu2 %1221 }
 0x233   : > { %v1224_v4 = vpop.permute.xlu2 %1223 }
 0x249   : > { %v1228_v63 = vpop.permute.xlu1 %1227  ;;  %v1129_v0 = vpop.permute.xlu0 %1128 }
 0x24a   : > { %1956 = vmatpush.xpose.msk.msra.mxu1 %vm1130_vm9, %v1129_v0  ;;  %1962 = vmatpush.xpose.msk.msra.mxu3 %vm1130_vm9, %v1228_v63 }
 0x251   : > { %v1226_v1 = vpop.permute.xlu1 %1225  ;;  %v1127_v2 = vpop.permute.xlu0 %1126 }
 0x252   : > { %1957 = vmatpush.xpose.msk.msra.mxu1 %vm1130_vm9, %v1127_v2  ;;  %1963 = vmatpush.xpose.msk.msra.mxu3 %vm1130_vm9, %v1226_v1 }
 0x255   : > { %1958 = vmatmul.msk.f32.vlgmr.msra.gmra.mxu1 %vm1130_vm9, %v1122_v58  ;;  %1964 = vmatmul.msk.f32.vlgmr.msra.gmra.mxu3 %vm1130_vm9, %v1222_v3 }
 0x256   : > { %1366 = vmatpush.msrb.mxu1 %v1119_v42 }
 0x25d   : > { %1959 = vmatmul.msk.f32.gmra.mxu1 %vm1130_vm9, %v1123_v61  ;;  %1965 = vmatmul.msk.f32.gmra.mxu3 %vm1130_vm9, %v1224_v4  ;;  %v1118_v61 = vld [vmem:[%s2303_s8] sm:$0xff] }
 0x25e   : > { %1367 = vmatpush.msrb.mxu1 %v1118_v61  ;;  %v2035_v4 = vld [vmem:[%s2643_s2] ss:$0 sm:$0xff]  ;;  %s2649_s2 = sld [smem:[#allocation21_spill]] (!%p1976_p5) }
 0x2d2   : > { %v1158_v6 = vpop.f32.mrf.mxu1 }
 0x2d3   : > { %v1159_v7 = vadd.f32 %v1158_v6, %v1078_v5 }
 0x2d5   : > { %v1164_v8 = vsel %vm1130_vm9, %v1159_v7, -inf }
 0x2d6   : > { %1165 = vmax.xlane.f32.xlu2 %v1164_v8 }
 0x2d8   : > { %v1254_v9 = vpop.f32.mrf.mxu3 }
 0x2d9   : > { %v1255_v11 = vadd.f32 %v1254_v9, %v1078_v5 }
 0x2da   : > { %v1161_v12 = vpop.f32.mrf.mxu1 }
 0x2db   : > { %v1162_v13 = vadd.f32 %v1161_v12, %v1079_v10  ;;  %v1260_v14 = vsel %vm1130_vm9, %v1255_v11, -inf }
 0x2dc   : > { %1261 = vmax.xlane.f32.xlu1 %v1260_v14 }
 0x2dd   : > { %v1167_v15 = vsel %vm1130_vm9, %v1162_v13, -inf }
 0x2de   : > { %1168 = vmax.xlane.f32.xlu0 %v1167_v15 }
 0x2e0   : > { %v1257_v16 = vpop.f32.mrf.mxu3 }
 0x2e1   : > { %v1258_v17 = vadd.f32 %v1257_v16, %v1079_v10  ;;  %v2128_v16 = vmov 32.0  }
 0x2e3   : > { %v1263_v18 = vsel %vm1130_vm9, %v1258_v17, -inf }
 0x2e4   : > { %1264 = vmax.xlane.f32.xlu2 %v1263_v18 }
 0x2f5   : > { %2025 = vrot.lane.b32.xlu1 %v2380_v62, %s2126_s23  ;;  %s2653_s23 = sld [smem:[#allocation25_spill]] (!%p1976_p5) }
 0x349   : > { %v1166_v21 = vpop.xlane.xlu2 %1165 }
 0x34a   : > { %v1170_v25 = vsub.f32 %v1159_v7, %v1166_v21 }
 0x34c   : > { %v1172_v27 = vmul.f32 1.442695, %v1170_v25 }
 0x34f   : > { %v1262_v19 = vpop.xlane.xlu1 %1261 }
 0x350   : > { %v1266_v20 = vsub.f32 %v1255_v11, %v1262_v19 }
 0x351   : > { %v1169_v22 = vpop.xlane.xlu0 %1168 }
 0x352   : > { %v1268_v23 = vmul.f32 1.442695, %v1266_v20  ;;  %v1171_v24 = vsub.f32 %v1162_v13, %v1169_v22 }
 0x354   : > { %2042 = vpow2.f32 %v1268_v23  ;;  %v1174_v26 = vmul.f32 1.442695, %v1171_v24 }
 0x356   : > { %2044 = vpow2.f32 %v1174_v26 }
 0x357   : > { %v1265_v28 = vpop.xlane.xlu2 %1264  ;;  %2046 = vpow2.f32 %v1172_v27 }
 0x358   : > { %v1267_v32 = vsub.f32 %v1258_v17, %v1265_v28 }
 0x35a   : > { %v2043_v29 = vpop.eup %2042  ;;  %v1270_v34 = vmul.f32 1.442695, %v1267_v32  ;;  %v1448_v32 = vld [vmem:[%s2320_s19 + $0x10] sm:$0xff] }
 0x35b   : > { %v1272_v30 = vsel %vm1130_vm9, %v2043_v29, 0.0 }
 0x35c   : > { %v2045_v31 = vpop.eup %2044  ;;  %1273 = vadd.xlane.f32.xlu2 %v1272_v30  ;;  %2048 = vpow2.f32 %v1270_v34  ;;  %v1446_v34 = vld [vmem:[%s2320_s19] sm:$0xff] }
 0x35d   : > { %v1179_v33 = vsel %vm1130_vm9, %v2045_v31, 0.0  ;;  %v2047_v35 = vpop.eup %2046 }
 0x35e   : > { %1180 = vadd.xlane.f32.xlu0 %v1179_v33  ;;  %v1176_v36 = vsel %vm1130_vm9, %v2047_v35, 0.0  ;;  %v1447_v33 = vld [vmem:[%s2320_s19 + $0x8] sm:$0xff] }
 0x362   : > { %v2049_v39 = vpop.eup %2048 }
 0x363   : > { %v1275_v41 = vsel %vm1130_vm9, %v2049_v39, 0.0 }
 0x366   : > { %1177 = vadd.xlane.f32.xlu0 %v1176_v36 }
 0x367   : > { %v2026_v37 = vpop.permute.xlu1 %2025 }
 0x368   : > { %v2027_v38 = vunpack.i.l.bf16 %v2026_v37  ;;  %v2028_v40 = vunpack.i.h.bf16 %v2026_v37 }
 0x36a   : > { %1212 = vmatpush.msrb.mxu0 %v2027_v38  ;;  %1991 = vmatpush.msra.mxu2 %v2027_v38 }
 0x36c   : > { %1213 = vmatpush.msrb.mxu0 %v2028_v40  ;;  %1992 = vmatpush.msra.mxu2 %v2028_v40 }
 0x36e   : > { %1276 = vadd.xlane.f32.xlu0 %v1275_v41  ;;  %1337 = vmatpush.msra.mxu0 %v1121_v60 }
 0x374   : > { %2030 = vrot.lane.b32.xlu2 %v2380_v62, %s2127_s3  ;;  %v1120_v62 = vld [vmem:[%s2303_s8 + $0x10] sm:$0xff] }
 0x375   : > { %1338 = vmatpush.msra.mxu0 %v1120_v62 }
 0x3cf   : > { %v1274_v43 = vpop.xlane.xlu2 %1273 }
 0x3d1   : > { %v1181_v44 = vpop.xlane.xlu0 %1180 }
 0x3d2   : > { %2050 = vrcp.f32 %v1181_v44 }
 0x3d3   : > { %2052 = vrcp.f32 %v1274_v43 }
 0x3d7   : > { %v2031_v45 = vpop.permute.xlu2 %2030 }
 0x3d8   : > { %v2051_v46 = vpop.eup %2050  ;;  %v2032_v47 = vunpack.i.l.bf16 %v2031_v45  ;;  %v2033_v50 = vunpack.i.h.bf16 %v2031_v45 }
 0x3d9   : > { %v1178_v48 = vpop.xlane.xlu0 %1177  ;;  %v1185_v49 = vmul.f32 %v2051_v46, %v2045_v31  ;;  %v2053_v51 = vpop.eup %2052  ;;  %v1449_v31 = vld [vmem:[%s2320_s19 + $0x18] sm:$0xff]  ;;  %s2656_s19 = sld [smem:[#allocation29_spill]] (!%p1976_p5) }
 0x3da   : > { %2054 = vrcp.f32 %v1178_v48  ;;  %1308 = vmatpush.msrb.mxu2 %v2032_v47  ;;  %v1280_v57 = vmul.f32 %v2053_v51, %v2043_v29  ;;  %1472 = vmatpush.msrb.mxu3 %v1449_v31  ;;  %v2039_v31 = vld [vmem:[%s997_s26] ss:$0 sm:$0xff] }
 0x3db   : > { %1961 = vmatmul.msk.f32.vlgmr.msra.gmra.mxu2 %vm1130_vm9, %v1185_v49  ;;  %v2036_v49 = vld [vmem:[%s978_s20] ss:$0 sm:$0xff] }
 0x3dc   : > { %1309 = vmatpush.msrb.mxu2 %v2033_v50  ;;  %1473 = vmatpush.msrb.mxu3 %v1448_v32 }
 0x3de   : > { %1474 = vmatpush.msrb.mxu3 %v1447_v33 }
 0x3e0   : > { %v2055_v52 = vpop.eup %2054  ;;  %1475 = vmatpush.msrb.mxu3 %v1446_v34 }
 0x3e1   : > { %v1277_v55 = vpop.xlane.xlu0 %1276  ;;  %v1184_v56 = vmul.f32 %v2055_v52, %v2047_v35 }
 0x3e2   : > { %2056 = vrcp.f32 %v1277_v55  ;;  %v2037_v55 = vld [vmem:[%s981_s0] ss:$0 sm:$0xff] }
 0x3e3   : > { %1960 = vmatmul.msk.f32.vlgmr.msrb.gmra.mxu0 %vm1130_vm9, %v1184_v56  ;;  %1966 = vmatmul.msk.f32.vlgmr.msrb.gmra.mxu2 %vm1130_vm9, %v1280_v57  ;;  %2058 = vrcp.f32 %v2128_v16 }
 0x3e8   : > { %v2057_v58 = vpop.eup %2056 }
 0x3e9   : > { %v1281_v59 = vmul.f32 %v2057_v58, %v2049_v39  ;;  %v2059_v17 = vpop.eup %2058 }
 0x3ea   : > { %v1392_v18 = vmul.f32 32.0, %v2059_v17  ;;  %vm1396_vm10 = vweird.f32 %v2059_v17 }
 0x3eb   : > { %1967 = vmatmul.msk.f32.gmra.mxu2 %vm1130_vm9, %v1281_v59 }
 0x3ec   : > { %v1393_v19 = vsub.f32 1.0, %v1392_v18 }
 0x3ee   : > { %v1394_v20 = vmul.f32 %v2059_v17, %v1393_v19 }
 0x45e   : > { %v1218_v63 = vpop.f32.mrf.mxu2 }
 0x460   : > { %v1215_v0 = vpop.f32.mrf.mxu0 }
 0x461   : > { %1970 = vmatmul.msk.f32.vlgmr.msrb.gmra.mxu1 %vm1130_vm9, %v1215_v0 }
 0x466   : > { %v1311_v1 = vpop.f32.mrf.mxu2 }
 0x467   : > { %1968 = vmatmul.msk.f32.vlgmr.msra.gmra.mxu0 %vm1130_vm9, %v1311_v1  ;;  %v1508_v1 = vld [vmem:[%s2330_s24 + $0x38] sm:$0xff] }
 0x468   : > { %1528 = vmatpush.msra.mxu2 %v1508_v1 }
 0x469   : > { %1971 = vmatmul.msk.f32.gmra.mxu1 %vm1130_vm9, %v1218_v63 }
 0x46e   : > { %v1314_v2 = vpop.f32.mrf.mxu2 }
 0x46f   : > { %1969 = vmatmul.msk.f32.gmra.mxu0 %vm1130_vm9, %v1314_v2  ;;  %v1507_v2 = vld [vmem:[%s2330_s24 + $0x30] sm:$0xff] }
 0x470   : > { %1529 = vmatpush.msra.mxu2 %v1507_v2  ;;  %v2040_v2 = vld [vmem:[%s1000_s10] ss:$0 sm:$0xff] }
 0x4de   : > { %v1369_v3 = vpop.f32.mrf.mxu1 }
 0x4e4   : > { %v1340_v5 = vpop.f32.mrf.mxu0 }
 0x4e5   : > { %v1370_v6 = vadd.f32 %v1369_v3, %v1340_v5  ;;  %v1506_v3 = vld [vmem:[%s2330_s24 + $0x28] sm:$0xff]  ;;  %v1504_v5 = vld [vmem:[%s2330_s24 + $0x18] sm:$0xff] }
 0x4e6   : > { %v1372_v10 = vpop.f32.mrf.mxu1  ;;  %1530 = vmatpush.msra.mxu2 %v1506_v3 }
 0x4e7   : > { %v1379_v7 = vadd.f32 %v2035_v4, %v1370_v6  ;;  %v1503_v6 = vld [vmem:[%s2330_s24 + $0x10] sm:$0xff] }
 0x4e9   : > { %v1381_v8 = vadd.f32 %v1379_v7, %v2367_v53  ;;  %v1395_v53 = vadd.f32 %v2059_v17, %v1394_v20  ;;  %v1502_v7 = vld [vmem:[%s2330_s24 + $0x8] sm:$0xff] }
 0x4eb   : > { %v1385_v9 = vsel %vm1088_vm8, %v1381_v8, 0.0  ;;  %v2427_v21 = vsel %vm1396_vm10, %v2059_v17, %v1395_v53 }
 0x4ec   : > { %1386 = vadd.xlane.f32.xlu0 %v1385_v9  ;;  %v1343_v11 = vpop.f32.mrf.mxu0  ;;  %v2038_v9 = vld [vmem:[%s989_s22] ss:$0 sm:$0xff] }
 0x4ed   : > { %v1373_v12 = vadd.f32 %v1372_v10, %v1343_v11 }
 0x4ef   : > { %v1380_v13 = vadd.f32 %v2035_v4, %v1373_v12  ;;  %v1505_v4 = vld [vmem:[%s2330_s24 + $0x20] sm:$0xff] }
 0x4f0   : > { %1531 = vmatpush.msra.mxu2 %v1505_v4  ;;  %v2041_v4 = vld [vmem:[%s1003_s29] ss:$0 sm:$0xff]  ;;  %s2654_s29 = sld [smem:[#allocation26_spill]] (!%p1976_p5) }
 0x4f1   : > { %v1382_v14 = vadd.f32 %v1380_v13, %v2371_v54 }
 0x4f2   : > { %1532 = vmatpush.msra.mxu2 %v1504_v5 }
 0x4f3   : > { %v1388_v15 = vsel %vm1088_vm8, %v1382_v14, 0.0 }
 0x4f4   : > { %1389 = vadd.xlane.f32.xlu1 %v1388_v15  ;;  %1533 = vmatpush.msra.mxu2 %v1503_v6 }
 0x4f6   : > { %1534 = vmatpush.msra.mxu2 %v1502_v7 }
 0x55f   : > { %v1387_v22 = vpop.xlane.xlu0 %1386 }
 0x560   : > { %v1398_v23 = vmul.f32 %v2427_v21, %v1387_v22 }
 0x562   : > { %v1400_v54 = vsub.f32 %v1381_v8, %v1398_v23  ;;  %v1501_v8 = vld [vmem:[%s2330_s24] sm:$0xff]  ;;  %s2647_s24 = sld [smem:[#allocation20_spill]] (!%p1976_p5) }
 0x563   : > { %1535 = vmatpush.msra.mxu2 %v1501_v8 }
 0x564   : > { %v1402_v24 = vmul.f32 %v1400_v54, %v1400_v54 }
 0x566   : > { %v1404_v25 = vsel %vm1088_vm8, %v1402_v24, 0.0 }
 0x567   : > { %1405 = vadd.xlane.f32.xlu0 %v1404_v25  ;;  %v1390_v26 = vpop.xlane.xlu1 %1389 }
 0x568   : > { %v1399_v27 = vmul.f32 %v2427_v21, %v1390_v26 }
 0x56a   : > { %v1401_v28 = vsub.f32 %v1382_v14, %v1399_v27 }
 0x56c   : > { %v1403_v29 = vmul.f32 %v1401_v28, %v1401_v28 }
 0x56e   : > { %v1407_v30 = vsel %vm1088_vm8, %v1403_v29, 0.0 }
 0x56f   : > { %1408 = vadd.xlane.f32.xlu2 %v1407_v30 }
 0x5da   : > { %v1406_v35 = vpop.xlane.xlu0 %1405 }
 0x5db   : > { %v1410_v36 = vmul.f32 %v1406_v35, %v2427_v21 }
 0x5dd   : > { %v1412_v37 = vadd.f32 1e-12, %v1410_v36 }
 0x5df   : > { %2060 = vrsqrt.f32 %v1412_v37  ;;  %vm1420_vm12 = vweird.f32 %v1412_v37 }
 0x5e2   : > { %v1409_v38 = vpop.xlane.xlu2 %1408 }
 0x5e3   : > { %v1411_v39 = vmul.f32 %v1409_v38, %v2427_v21 }
 0x5e5   : > { %v2061_v40 = vpop.eup %2060  ;;  %v1413_v41 = vadd.f32 1e-12, %v1411_v39 }
 0x5e6   : > { %v1415_v42 = vmul.f32 %v2061_v40, %v1412_v37  ;;  %vm1421_vm11 = vweird.f32 %v2061_v40 }
 0x5e7   : > { %2062 = vrsqrt.f32 %v1413_v41  ;;  %vm1422_vm13 = vmor %vm1420_vm12, %vm1421_vm11  ;;  %vm1430_vm15 = vweird.f32 %v1413_v41 }
 0x5e8   : > { %v1416_v43 = vmul.f32 %v2061_v40, %v1415_v42 }
 0x5ea   : > { %v1417_v44 = vmul.f32 0.5, %v1416_v43 }
 0x5ec   : > { %v1418_v45 = vsub.f32 1.5, %v1417_v44 }
 0x5ed   : > { %v2063_v46 = vpop.eup %2062 }
 0x5ee   : > { %v1419_v47 = vmul.f32 %v2061_v40, %v1418_v45  ;;  %v1425_v48 = vmul.f32 %v2063_v46, %v1413_v41  ;;  %vm1431_vm14 = vweird.f32 %v2063_v46 }
 0x5ef   : > { %vm1432_vm0 = vmor %vm1430_vm15, %vm1431_vm14 }
 0x5f0   : > { %v1423_v50 = vsel %vm1422_vm13, %v2061_v40, %v1419_v47  ;;  %v1426_v51 = vmul.f32 %v2063_v46, %v1425_v48 }
 0x5f1   : > { %v1434_v52 = vmul.f32 %v1423_v50, %v1400_v54 }
 0x5f2   : > { %v1427_v56 = vmul.f32 0.5, %v1426_v51 }
 0x5f3   : > { %v1439_v57 = vmul.f32 %v2036_v49, %v1434_v52 }
 0x5f4   : > { %v1428_v58 = vsub.f32 1.5, %v1427_v56 }
 0x5f5   : > { %v1444_v59 = vadd.f32 %v2037_v55, %v1439_v57 }
 0x5f6   : > { %v1429_v60 = vmul.f32 %v2063_v46, %v1428_v58 }
 0x5f7   : > { %1972 = vmatmul.msk.f32.vlgmr.msrb.gmra.mxu3 %vm1088_vm8, %v1444_v59 }
 0x5f8   : > { %v1433_v61 = vsel %vm1432_vm0, %v2063_v46, %v1429_v60 }
 0x5f9   : > { %v1435_v62 = vmul.f32 %v1433_v61, %v1401_v28 }
 0x5fb   : > { %v1440_v63 = vmul.f32 %v2036_v49, %v1435_v62 }
 0x5fd   : > { %v1445_v0 = vadd.f32 %v2037_v55, %v1440_v63 }
 0x5ff   : > { %1973 = vmatmul.msk.f32.gmra.mxu3 %vm1088_vm8, %v1445_v0 }
 0x67a   : > { %v1477_v10 = vpop.f32.mrf.mxu3 }
 0x67b   : > { %v1478_v11 = vadd.f32 %v2038_v9, %v1477_v10 }
 0x67d   : > { %v1485_v12 = vmul.f32 0.044715, %v1478_v11  ;;  %v1483_v24 = vmul.f32 0.5, %v1478_v11 }
 0x67f   : > { %v1487_v13 = vmul.f32 %v1485_v12, %v1478_v11 }
 0x681   : > { %v1489_v14 = vmul.f32 %v1487_v13, %v1478_v11 }
 0x682   : > { %v1480_v15 = vpop.f32.mrf.mxu3 }
 0x683   : > { %v1491_v16 = vadd.f32 %v1489_v14, %v1478_v11  ;;  %v1481_v17 = vadd.f32 %v2038_v9, %v1480_v15 }
 0x685   : > { %v1493_v18 = vmul.f32 0.7978846, %v1491_v16  ;;  %v1486_v19 = vmul.f32 0.044715, %v1481_v17  ;;  %v1484_v28 = vmul.f32 0.5, %v1481_v17 }
 0x687   : > { %2064 = vtanh.f32 %v1493_v18  ;;  %v1488_v20 = vmul.f32 %v1486_v19, %v1481_v17 }
 0x689   : > { %v1490_v53 = vmul.f32 %v1488_v20, %v1481_v17 }
 0x68b   : > { %v1492_v22 = vadd.f32 %v1490_v53, %v1481_v17 }
 0x68d   : > { %v2065_v23 = vpop.eup %2064  ;;  %v1494_v54 = vmul.f32 0.7978846, %v1492_v22 }
 0x68e   : > { %v1497_v25 = vadd.f32 1.0, %v2065_v23 }
 0x68f   : > { %2066 = vtanh.f32 %v1494_v54 }
 0x690   : > { %v1499_v26 = vmul.f32 %v1497_v25, %v1483_v24 }
 0x692   : > { %1974 = vmatmul.msk.f32.vlgmr.msra.gmra.mxu2 %vm1513_vm1, %v1499_v26 }
 0x695   : > { %v2067_v27 = vpop.eup %2066 }
 0x696   : > { %v1498_v29 = vadd.f32 1.0, %v2067_v27 }
 0x698   : > { %v1500_v30 = vmul.f32 %v1498_v29, %v1484_v28 }
 0x69a   : > { %1975 = vmatmul.msk.f32.gmra.mxu2 %vm1513_vm1, %v1500_v30 }
 0x715   : > { %v1537_v32 = vpop.f32.mrf.mxu2 }
 0x716   : > { %v1538_v33 = vadd.f32 %v2039_v31, %v1537_v32 }
 0x718   : > { %v1543_v34 = vadd.f32 %v1538_v33, %v1444_v59 }
 0x71a   : > { %v1547_v35 = vsel %vm1088_vm8, %v1543_v34, 0.0 }
 0x71b   : > { %1548 = vadd.xlane.f32.xlu0 %v1547_v35 }
 0x71d   : > { %v1540_v36 = vpop.f32.mrf.mxu2 }
 0x71e   : > { %v1541_v37 = vadd.f32 %v2039_v31, %v1540_v36 }
 0x720   : > { %v1544_v38 = vadd.f32 %v1541_v37, %v1445_v0 }
 0x722   : > { %v1550_v39 = vsel %vm1088_vm8, %v1544_v38, 0.0 }
 0x723   : > { %1551 = vadd.xlane.f32.xlu0 %v1550_v39 }
 0x78e   : > { %v1549_v40 = vpop.xlane.xlu0 %1548 }
 0x78f   : > { %v1553_v41 = vmul.f32 %v1549_v40, %v2427_v21 }
 0x791   : > { %v1555_v42 = vsub.f32 %v1543_v34, %v1553_v41 }
 0x793   : > { %v1557_v43 = vmul.f32 %v1555_v42, %v1555_v42 }
 0x795   : > { %v1559_v44 = vsel %vm1088_vm8, %v1557_v43, 0.0 }
 0x796   : > { %1560 = vadd.xlane.f32.xlu0 %v1559_v44  ;;  %v1552_v45 = vpop.xlane.xlu0 %1551 }
 0x797   : > { %v1554_v46 = vmul.f32 %v1552_v45, %v2427_v21 }
 0x799   : > { %v1556_v47 = vsub.f32 %v1544_v38, %v1554_v46 }
 0x79b   : > { %v1558_v48 = vmul.f32 %v1556_v47, %v1556_v47 }
 0x79d   : > { %v1562_v49 = vsel %vm1088_vm8, %v1558_v48, 0.0 }
 0x79e   : > { %1563 = vadd.xlane.f32.xlu0 %v1562_v49 }
 0x809   : > { %v1561_v50 = vpop.xlane.xlu0 %1560 }
 0x80a   : > { %v1565_v51 = vmul.f32 %v1561_v50, %v2427_v21 }
 0x80c   : > { %v1567_v52 = vadd.f32 1e-12, %v1565_v51 }
 0x80e   : > { %2068 = vrsqrt.f32 %v1567_v52  ;;  %vm1575_vm3 = vweird.f32 %v1567_v52 }
 0x811   : > { %v1564_v55 = vpop.xlane.xlu0 %1563 }
 0x812   : > { %v1566_v56 = vmul.f32 %v1564_v55, %v2427_v21 }
 0x814   : > { %v2069_v57 = vpop.eup %2068  ;;  %v1568_v58 = vadd.f32 1e-12, %v1566_v56 }
 0x815   : > { %v1570_v59 = vmul.f32 %v2069_v57, %v1567_v52  ;;  %vm1576_vm2 = vweird.f32 %v2069_v57 }
 0x816   : > { %2070 = vrsqrt.f32 %v1568_v58  ;;  %vm1577_vm4 = vmor %vm1575_vm3, %vm1576_vm2  ;;  %vm1585_vm6 = vweird.f32 %v1568_v58 }
 0x817   : > { %v1571_v60 = vmul.f32 %v2069_v57, %v1570_v59 }
 0x819   : > { %v1572_v61 = vmul.f32 0.5, %v1571_v60 }
 0x81b   : > { %v1573_v62 = vsub.f32 1.5, %v1572_v61 }
 0x81c   : > { %v2071_v63 = vpop.eup %2070 }
 0x81d   : > { %v1574_v0 = vmul.f32 %v2069_v57, %v1573_v62  ;;  %v1580_v1 = vmul.f32 %v2071_v63, %v1568_v58  ;;  %vm1586_vm5 = vweird.f32 %v2071_v63 }
 0x81e   : > { %vm1587_vm7 = vmor %vm1585_vm6, %vm1586_vm5 }
 0x81f   : > { %v1578_v21 = vsel %vm1577_vm4, %v2069_v57, %v1574_v0  ;;  %v1581_v3 = vmul.f32 %v2071_v63, %v1580_v1 }
 0x820   : > { %v1589_v5 = vmul.f32 %v1578_v21, %v1555_v42 }
 0x821   : > { %v1582_v6 = vmul.f32 0.5, %v1581_v3 }
 0x822   : > { %v1594_v7 = vmul.f32 %v2040_v2, %v1589_v5 }
 0x823   : > { %v1583_v8 = vsub.f32 1.5, %v1582_v6 }
 0x824   : > { %v1599_v9 = vadd.f32 %v2041_v4, %v1594_v7 }
 0x825   : > { %v1584_v10 = vmul.f32 %v2071_v63, %v1583_v8 }
 0x826   : > { %1601 = vst.msk [vmem:[#allocation2] sm:$0xff] %vm1088_vm8, %v1599_v9 }
 0x827   : > { %v1588_v11 = vsel %vm1587_vm7, %v2071_v63, %v1584_v10 }
 0x828   : > { %v1590_v12 = vmul.f32 %v1588_v11, %v1556_v47 }
 0x82a   : > { %v1595_v13 = vmul.f32 %v2040_v2, %v1590_v12  ;;  %1606 = sbr.rel (%p1976_p5) target bundleno = 2773 (0xad5), region = 140 }
 0x82c   : > { %v1600_v14 = vadd.f32 %v2041_v4, %v1595_v13 }
 0x82e   : > { %1602 = vst.msk [vmem:[#allocation2 + $0x8] sm:$0xff] %vm1088_vm8, %v1600_v14 }
 0x82f   : > { %1632 = vmatpush.msra.mxu0 %v1600_v14  ;;  %v1607_v15 = vlaneseq  ;;  %v1641_v16 = vld [vmem:[%s2584_s16 + $0x18] sm:$0xff]  ;;  %v1640_v17 = vld [vmem:[%s2584_s16 + $0x10] sm:$0xff]  ;;  %v1639_v18 = vld [vmem:[%s2584_s16 + $0x8] sm:$0xff]  ;;  %v2129_v22 = vmov 0.0  }
 0x830   : > { %1661 = vmatpush.msra.mxu1 %v1641_v16  ;;  %v1638_v54 = vld [vmem:[%s2584_s16] sm:$0xff]  ;;  %v1673_v25 = vld [vmem:[%s2586_s18 + $0x18] sm:$0xff]  ;;  %v1672_v26 = vld [vmem:[%s2586_s18 + $0x10] sm:$0xff] }
 0x831   : > { %1633 = vmatpush.msra.mxu0 %v1599_v9  ;;  %v1608_v19 = vand.u32 127, %v1607_v15  ;;  %v1610_v20 = vshrl.u32 %v1607_v15, 7  ;;  %1693 = vmatpush.msra.mxu2 %v1673_v25  ;;  %v1671_v27 = vld [vmem:[%s2586_s18 + $0x8] sm:$0xff]  ;;  %v1670_v28 = vld [vmem:[%s2586_s18] sm:$0xff]  ;;  %v1715_v33 = vld [vmem:[%s2648_s21 + $0x18] sm:$0xff] }
 0x832   : > { %1662 = vmatpush.msra.mxu1 %v1640_v17  ;;  %v2072_v29 = vld [vmem:[%s2647_s24] ss:$0 sm:$0xff]  ;;  %1735 = vmatpush.msra.mxu3 %v1715_v33  ;;  %v1714_v34 = vld [vmem:[%s2648_s21 + $0x10] sm:$0xff]  ;;  %v1713_v35 = vld [vmem:[%s2648_s21 + $0x8] sm:$0xff] }
 0x833   : > { %v1611_v53 = vmul.u32 8, %v1610_v20  ;;  %1694 = vmatpush.msra.mxu2 %v1672_v26  ;;  %v1712_v36 = vld [vmem:[%s2648_s21] sm:$0xff]  ;;  %v1755_v45 = vld [vmem:[%s2652_s27 + $0x8] sm:$0xff] }
 0x834   : > { %1663 = vmatpush.msra.mxu1 %v1639_v18  ;;  %1736 = vmatpush.msra.mxu3 %v1714_v34  ;;  %v2073_v37 = vld [vmem:[%s2649_s2] ss:$0 sm:$0xff] }
 0x835   : > { %vm1612_vm10 = vcmp.eq.s32.totalorder %v1608_v19, %v1611_v53  ;;  %1695 = vmatpush.msra.mxu2 %v1671_v27  ;;  %v2074_v38 = vld [vmem:[%s2650_s7] ss:$0 sm:$0xff]  ;;  %1777 = vmatpush.msrb.mxu0 %v1755_v45 }
 0x836   : > { %v1977_v23 = vsel %vm1612_vm10, 1.0, %v2129_v22  ;;  %1664 = vmatpush.msra.mxu1 %v1638_v54  ;;  %1737 = vmatpush.msra.mxu3 %v1713_v35  ;;  %v2075_v41 = vld [vmem:[%s2651_s4] ss:$0 sm:$0xff] }
 0x837   : > { %1978 = vmatmul.msk.f32.vlgmr.msra.gmra.mxu0 %vm1130_vm9, %v1977_v23  ;;  %1696 = vmatpush.msra.mxu2 %v1670_v28  ;;  %v1754_v46 = vld [vmem:[%s2652_s27] sm:$0xff] }
 0x838   : > { %1738 = vmatpush.msra.mxu3 %v1712_v36  ;;  %1778 = vmatpush.msrb.mxu0 %v1754_v46  ;;  %v2076_v47 = vld [vmem:[%s2653_s23] ss:$0 sm:$0xff] }
 0x839   : > { %v2077_v48 = vld [vmem:[%s2654_s29] ss:$0 sm:$0xff] }
 0x83a   : > { %v2078_v51 = vld [vmem:[%s2655_s30] ss:$0 sm:$0xff] }
 0x83b   : > { %v2079_v57 = vld [vmem:[%s2656_s19] ss:$0 sm:$0xff] }
 0x8b4   : > { %v1635_v24 = vpop.f32.mrf.mxu0 }
 0x8b5   : > { %1979 = vmatmul.msk.f32.vlgmr.msra.gmra.mxu1 %vm1088_vm8, %v1635_v24 }
 0x932   : > { %v1666_v30 = vpop.f32.mrf.mxu1 }
 0x933   : > { %v1667_v31 = vadd.f32 %v2072_v29, %v1666_v30 }
 0x935   : > { %2080 = vtanh.f32 %v1667_v31 }
 0x93b   : > { %v2081_v32 = vpop.eup %2080 }
 0x93c   : > { %1980 = vmatmul.msk.f32.vlgmr.msra.gmra.mxu2 %vm1088_vm8, %v2081_v32 }
 0x9bf   : > { %v1698_v39 = vpop.f32.mrf.mxu2 }
 0x9c0   : > { %v1699_v40 = vadd.f32 %v2073_v37, %v1698_v39 }
 0x9c2   : > { %v1705_v42 = vmul.f32 %v2074_v38, %v1699_v40 }
 0x9c4   : > { %v1710_v43 = vadd.f32 %v2075_v41, %v1705_v42 }
 0x9c6   : > { %v1711_v44 = vmax.f32 %v1710_v43, 0.0 }
 0x9c8   : > { %1981 = vmatmul.msk.f32.vlgmr.msra.gmra.mxu3 %vm1088_vm8, %v1711_v44  ;;  %vm1783_vm8 = vcmask 17408  }
 0xa4b   : > { %v1740_v49 = vpop.f32.mrf.mxu3 }
 0xa4c   : > { %v1741_v50 = vadd.f32 %v2076_v47, %v1740_v49 }
 0xa4e   : > { %v1747_v52 = vmul.f32 %v2077_v48, %v1741_v50 }
 0xa50   : > { %v1752_v55 = vadd.f32 %v2078_v51, %v1747_v52 }
 0xa52   : > { %v1753_v56 = vmax.f32 %v1752_v55, 0.0 }
 0xa54   : > { %1982 = vmatmul.msk.f32.vlgmr.msrb.gmra.mxu0 %vm1130_vm9, %v1753_v56 }
 0xad1   : > { %v1780_v58 = vpop.f32.mrf.mxu0 }
 0xad2   : > { %v1781_v59 = vadd.f32 %v2079_v57, %v1780_v58 }
 0xad4   : > { %1784 = vst.msk [vmem:[#allocation3] sm:$0x3] %vm1783_vm8, %v1781_v59 }
 0xad5 PF: > { %p1997_p6 = scmp.eq.s32.totalorder %s2282_s5, 1  ;;  %s2130_s8 = smov [#allocation3]  }
 0xad6   : > { %s1791_s7 = sshll.u32 %s2130_s8, 4  ;;  %s2657_s4 = sld [smem:[#allocation30_spill]]  ;;  %s1792_s7 = int_to_ptr.vmem [resolvable:$true] %s1791_s7 }
 0xadc   : > { %s1793_s20 = sshll.u32 %s2657_s4, 4  ;;  %s1794_s20 = int_to_ptr.hbm [resolvable:$true] %s1793_s20 }
 0xadd   : > { %1994 = dma.vmem_to_hbm [thread:$0]  (%p1997_p6), %s1792_s7, 32, %s1794_s20, [#allocation4]  }
 0xade   : > { %2115 = dma.done.wait (%p1997_p6), [#allocation4], 32  }
 0xadf   : > { %2117 = vsyncadd (%p1997_p6), [#allocation4], 4294967264 }
 0xae0 PF: > { %s2658_s0 = sld [smem:[#allocation6_spill]] }
 0xae6   : > { %s39_s8 = sadd.s32 1, %s2658_s0  }
 0xae7   : > { %p36_p7 = scmp.ge.s32.totalorder %s39_s8, 4  }
 0xae9   :  { %38 = sbr.rel (!%p36_p7) target bundleno = 26 (0x1a), region = 200 }
 0xaee   :  { %1807 = vsyncpa [#allocation4], 1 }
 0xaef   :  { %1809 = vsyncpa [#allocation4 + $0x1], 1 }

</bundles_post_ra>
